<compile_context>
chip_gen: v7x
topology: tpu7x:2x2x1
jax: 0.10.0
libtpu: 0.0.40
codegen_flags: <defaults>
</compile_context>

<pallas_src>
import functools

import jax
import jax.numpy as jnp
from jax import lax
from jax.experimental import pallas as pl
from jax.experimental.pallas import tpu as pltpu

LAM_GEO = 1.0
LAM_TOP = 1.0
LANE = 128


def _round_up(n, m):
    return ((n + m - 1) // m) * m


def _geotop_dist_kernel(x_ref, z_ref, sqx_ref, sqz_ref, wd_ref, bd_ref,
                        dx_ref, dz_ref, sse_ref, *, tb):
    """One grid step = one row block of TB points vs. all B points.

    Emits the (TB, B) distance tiles for x and z plus the per-block partial
    reconstruction SSE.  All inputs are resident f32 (encoder, norms and all
    dtype casts hoisted to the wrapper)."""
    i = pl.program_id(0)
    row0 = pl.multiple_of(i * tb, tb)
    b_all = x_ref.shape[0]

    x_all = x_ref[...]                       # (B, D)  resident in VMEM
    z_all = z_ref[...]                       # (B, Hp) resident in VMEM
    x_blk = x_ref[pl.ds(row0, tb), :]        # (TB, D) free ref slice
    z_blk = z_ref[pl.ds(row0, tb), :]        # (TB, Hp)

    # Diagonal mask built once per step and shared by the dx / dz epilogues.
    r = lax.broadcasted_iota(jnp.int32, (tb, b_all), 0) + row0
    c = lax.broadcasted_iota(jnp.int32, (tb, b_all), 1)
    offdiag = r != c

    def pdist(blk, all_pts, sq_all):
        # f32 cross Gram on the MXU: keeps the short distances (the edges the
        # persistence pairing actually selects) free of bf16 cancellation.
        g = lax.dot_general(blk, all_pts, (((1,), (1,)), ((), ())),
                            preferred_element_type=jnp.float32)      # (TB, B)
        sq_blk = jnp.sum(blk * blk, axis=-1, keepdims=True)          # (TB, 1)
        d2 = sq_blk + sq_all - 2.0 * g
        valid = offdiag & (d2 > 0.0)          # exact-zero diag, clamp d2 <= 0
        return jnp.where(valid, jnp.sqrt(jnp.where(valid, d2, 1.0)), 0.0)

    dx_ref[...] = pdist(x_blk, x_all, sqx_ref[...])                  # (TB, B)
    dz_ref[...] = pdist(z_blk, z_all, sqz_ref[...])                  # (TB, B)

    # Decoder row block + partial reconstruction SSE (no (B, D) x_hat
    # writeback; the wrapper sums the (nb, 1, D) partials and divides).
    x_hat = jnp.dot(z_blk, wd_ref[...],
                    preferred_element_type=jnp.float32) + bd_ref[...]
    diff = x_hat - x_blk
    part = jnp.sum(diff * diff, axis=0, keepdims=True)               # (1, D)
    sse_ref[...] = part.reshape(sse_ref.shape)


def dist_recon_pallas(x, z_p, sqx, sqz, w_dec_p, b_dec, *, tb,
                      vmem_limit_bytes=32 * 1024 * 1024):
    """Fused distance-matrix + decoder-SSE kernel, row-block grid ("parallel")."""
    B, D = x.shape
    Hp = z_p.shape[1]
    assert B % tb == 0 and tb % 8 == 0, "row tile must divide B and be 8-aligned"
    assert Hp % LANE == 0, "latent dim must be padded to a lane multiple"
    nb = B // tb
    # TODO(synk): for large B, add a second grid axis tiling the column (all-
    # points) dimension of the dist tiles so per-step VMEM stays bounded on
    # v7x (64 MiB), and/or emit the dist tiles in bf16 on v5e.

    def full(shape):
        return pl.BlockSpec(shape, lambda i: (0, 0))

    cost = pl.CostEstimate(
        flops=2 * B * B * (D + Hp) + 2 * B * Hp * D,       # grams + decoder
        transcendentals=0,
        bytes_accessed=(B * D + B * Hp + 2 * B + Hp * D + D) * 4
                       + (2 * B * B + nb * D) * 4,
    )

    return pl.pallas_call(
        functools.partial(_geotop_dist_kernel, tb=tb),
        grid=(nb,),
        in_specs=[
            full((B, D)),          # x       (resident)
            full((B, Hp)),         # z       (resident, computed once in wrapper)
            full((1, B)),          # |x_i|^2 (precomputed, exact f32)
            full((1, B)),          # |z_i|^2
            full((Hp, D)),         # W_dec   (zero rows for padded latents)
            full((1, D)),          # b_dec
        ],
        out_specs=(
            pl.BlockSpec((tb, B), lambda i: (i, 0)),       # dist_x row block
            pl.BlockSpec((tb, B), lambda i: (i, 0)),       # dist_z row block
            pl.BlockSpec((1, 1, D), lambda i: (i, 0, 0)),  # partial recon SSE
        ),
        out_shape=(
            jax.ShapeDtypeStruct((B, B), jnp.float32),
            jax.ShapeDtypeStruct((B, B), jnp.float32),
            jax.ShapeDtypeStruct((nb, 1, D), jnp.float32),
        ),
        compiler_params=pltpu.CompilerParams(
            dimension_semantics=("parallel",),     # megacore-shardable on v7x
            vmem_limit_bytes=vmem_limit_bytes),
        cost_estimate=cost,
    )(x, z_p, sqx, sqz, w_dec_p, b_dec)


def mst_edges(dist):
    """0-dim Vietoris-Rips persistence pairing == MST edges (Prim's algorithm).

    Combinatorial / serial, so it runs in plain JAX (lax.fori_loop).
    Returns the (B-1,) edge endpoint index arrays.
    """
    n = dist.shape[0]
    in_tree = jnp.zeros((n,), dtype=bool).at[0].set(True)
    min_dist = dist[0]
    min_src = jnp.zeros((n,), jnp.int32)
    edges_i = jnp.zeros((n - 1,), jnp.int32)
    edges_j = jnp.zeros((n - 1,), jnp.int32)

    def body(k, carry):
        in_tree, min_dist, min_src, edges_i, edges_j = carry
        masked = jnp.where(in_tree, jnp.inf, min_dist)
        j = jnp.argmin(masked).astype(jnp.int32)
        i = min_src[j]
        edges_i = edges_i.at[k].set(i)
        edges_j = edges_j.at[k].set(j)
        in_tree = in_tree.at[j].set(True)
        dj = dist[j]
        better = (dj < min_dist) & (~in_tree)
        min_src = jnp.where(better, j, min_src)
        min_dist = jnp.where(better, dj, min_dist)
        return in_tree, min_dist, min_src, edges_i, edges_j

    carry = (in_tree, min_dist, min_src, edges_i, edges_j)
    _, _, _, edges_i, edges_j = lax.fori_loop(0, n - 1, body, carry)
    return edges_i, edges_j


def signature_loss(dist_x, dist_z, edges_x, edges_z):
    """SignatureLoss(p=2, normalise=False, dimensions=0) (Moor et al. 2020):
       0.5 * (||d_X[pi_X] - d_Z[pi_X]||_2^2 + ||d_Z[pi_Z] - d_X[pi_Z]||_2^2)."""
    xi, xj = edges_x
    zi, zj = edges_z
    x_sig_x = dist_x[xi, xj]
    x_sig_z = dist_z[xi, xj]
    z_sig_z = dist_z[zi, zj]
    z_sig_x = dist_x[zi, zj]
    return 0.5 * (jnp.sum((x_sig_x - x_sig_z) ** 2)
                  + jnp.sum((z_sig_z - z_sig_x) ** 2))


@functools.partial(jax.jit, static_argnames=("tb",))
def _geotop_losses(x, w_enc, b_enc, w_dec, b_dec, *, tb):
    B, D = x.shape
    H = w_enc.shape[1]
    Hp = _round_up(H, LANE)

    # --- encoder hoisted out of the kernel: computed ONCE, full f32 ---
    z = jnp.dot(x, w_enc, precision=lax.Precision.HIGHEST) + b_enc      # (B, H)

    # Zero-pad the latent dimension to a full lane width (128).  Padded latent
    # coordinates are identically zero, so x_hat, the reconstruction loss and
    # dist_z are mathematically unchanged while kernel stores stay lane-dense.
    z_p = jnp.zeros((B, Hp), jnp.float32).at[:, :H].set(z)
    w_dec_p = jnp.zeros((Hp, D), jnp.float32).at[:H, :].set(w_dec)

    # Per-point squared norms hoisted out of the kernel (exact f32, once).
    sqx = jnp.sum(x * x, axis=-1)[None, :]        # (1, B)
    sqz = jnp.sum(z_p * z_p, axis=-1)[None, :]    # (1, B)

    dist_x, dist_z, sse_part = dist_recon_pallas(
        x, z_p, sqx, sqz, w_dec_p, b_dec, tb=tb)

    # recon_loss = model(x): MSE between reconstruction and input, finished
    # from the per-block partial SSEs the kernel emitted.
    recon_loss = jnp.sum(sse_part) / (B * D)

    # DeviationFromIsometry(decoder)(z): linear decoder => Jacobian J = W_dec^T
    # is constant, so this reduces to ||W_dec W_dec^T - I_H||_F^2 and depends
    # only on the (unpadded) weights.
    # TODO(synk): a nonlinear decoder needs per-sample Jacobians (jax.jacfwd).
    gram_dec = jnp.dot(w_dec, w_dec.T, precision=lax.Precision.HIGHEST)
    geo = jnp.sum((gram_dec - jnp.eye(H, dtype=jnp.float32)) ** 2)

    # 0-dim persistence pairing + SignatureLoss stay in plain JAX.
    # TODO(synk): at large B, fuse the pairing into a second Pallas kernel that
    # consumes distance tiles while still in VMEM to cut the B^2 HBM round trip.
    edges_x = mst_edges(dist_x)
    edges_z = mst_edges(dist_z)
    topo_loss = LAM_TOP * signature_loss(dist_x, dist_z, edges_x, edges_z) / B
    geo_loss = LAM_GEO * geo
    loss = recon_loss + topo_loss + geo_loss
    return loss, recon_loss, geo_loss, topo_loss


def geotop_autoencoder_forward(x, params, *, tb=128):
    """Mirrors GeoTopAutoencoder.forward: returns (loss, loss_dict)."""
    # TODO(synk): isVAE reparameterization branch not implemented (isVAE=False).
    loss, recon, geo, top = _geotop_losses(
        x, params["w_enc"], params["b_enc"], params["w_dec"], params["b_dec"],
        tb=tb)
    jax.block_until_ready(loss)
    loss_dict = {
        "loss": [float(loss)],
        "recon": [float(recon)],
        "geo": [float(geo)],
        "top": [float(top)],
    }
    return loss, loss_dict


if __name__ == "__main__":
    B, D, H = 256, 128, 32   # points, input features, latent dim
    TB = 128                 # row-block tile -> grid = (B // TB,) = (2,)

    key = jax.random.PRNGKey(0)
    kx, k1, k2, k3, k4 = jax.random.split(key, 5)
    x = jax.random.normal(kx, (B, D), jnp.float32)
    params = {
        "w_enc": jax.random.normal(k1, (D, H), jnp.float32) / (D ** 0.5),
        "b_enc": 0.01 * jax.random.normal(k2, (1, H), jnp.float32),
        "w_dec": jax.random.normal(k3, (H, D), jnp.float32) / (H ** 0.5),
        "b_dec": 0.01 * jax.random.normal(k4, (1, D), jnp.float32),
    }

    loss, loss_dict = geotop_autoencoder_forward(x, params, tb=TB)
    jax.block_until_ready(loss)
    print("KERNEL_OK")
</pallas_src>

<mosaic_0001>
module attributes {stable_mosaic.version = 11 : i64} {
  func.func @_geotop_dist_kernel(%arg0: i32, %arg1: memref<256x128xf32, #tpu.memory_space<vmem>>, %arg2: memref<256x128xf32, #tpu.memory_space<vmem>>, %arg3: memref<1x256xf32, #tpu.memory_space<vmem>>, %arg4: memref<1x256xf32, #tpu.memory_space<vmem>>, %arg5: memref<128x128xf32, #tpu.memory_space<vmem>>, %arg6: memref<1x128xf32, #tpu.memory_space<vmem>>, %arg7: memref<128x256xf32, #tpu.memory_space<vmem>>, %arg8: memref<128x256xf32, #tpu.memory_space<vmem>>, %arg9: memref<1x1x128xf32, #tpu.memory_space<vmem>>) attributes {dimension_semantics = [#tpu.dimension_semantics<parallel>], iteration_bounds = array<i64: 2>, scalar_prefetch = 0 : i64, scratch_operands = 0 : i64, tpu.core_type = #tpu.core_type<tc>, window_params = [{pipeline_mode = #tpu.pipeline_mode<synchronous>, transform_indices = @transform_0, window_bounds = array<i64: 256, 128>}, {pipeline_mode = #tpu.pipeline_mode<synchronous>, transform_indices = @transform_1, window_bounds = array<i64: 256, 128>}, {pipeline_mode = #tpu.pipeline_mode<synchronous>, transform_indices = @transform_2, window_bounds = array<i64: 1, 256>}, {pipeline_mode = #tpu.pipeline_mode<synchronous>, transform_indices = @transform_3, window_bounds = array<i64: 1, 256>}, {pipeline_mode = #tpu.pipeline_mode<synchronous>, transform_indices = @transform_4, window_bounds = array<i64: 128, 128>}, {pipeline_mode = #tpu.pipeline_mode<synchronous>, transform_indices = @transform_5, window_bounds = array<i64: 1, 128>}, {transform_indices = @transform_6, window_bounds = array<i64: 128, 256>}, {transform_indices = @transform_7, window_bounds = array<i64: 128, 256>}, {transform_indices = @transform_8, window_bounds = array<i64: 1, 1, 128>}]} {
    %c128_i32 = arith.constant 128 : i32
    %0 = arith.muli %arg0, %c128_i32 : i32
    %1 = tpu.assume_multiple %0, 128 : i32
    %c0 = arith.constant 0 : index
    %c0_0 = arith.constant 0 : index
    %2 = vector.load %arg1[%c0, %c0_0] : memref<256x128xf32, #tpu.memory_space<vmem>>, vector<256x128xf32>
    %c0_1 = arith.constant 0 : index
    %c0_2 = arith.constant 0 : index
    %3 = vector.load %arg2[%c0_1, %c0_2] : memref<256x128xf32, #tpu.memory_space<vmem>>, vector<256x128xf32>
    %4 = arith.index_cast %1 : i32 to index
    %c0_3 = arith.constant 0 : index
    %5 = vector.load %arg1[%4, %c0_3] : memref<256x128xf32, #tpu.memory_space<vmem>>, vector<128x128xf32>
    %6 = arith.index_cast %1 : i32 to index
    %c0_4 = arith.constant 0 : index
    %7 = vector.load %arg2[%6, %c0_4] : memref<256x128xf32, #tpu.memory_space<vmem>>, vector<128x128xf32>
    %8 = tpu.iota {dimensions = array<i32: 0>} : vector<128x256xi32>
    %9 = vector.broadcast %1 : i32 to vector<128x256xi32>
    %10 = arith.addi %8, %9 : vector<128x256xi32>
    %11 = tpu.iota {dimensions = array<i32: 1>} : vector<128x256xi32>
    %12 = arith.cmpi ne, %10, %11 : vector<128x256xi32>
    %c0_5 = arith.constant 0 : index
    %c0_6 = arith.constant 0 : index
    %13 = vector.load %arg3[%c0_5, %c0_6] : memref<1x256xf32, #tpu.memory_space<vmem>>, vector<1x256xf32>
    %cst = arith.constant dense<0.000000e+00> : vector<128x256xf32>
    %14 = tpu.matmul %5, %2, %cst {dimension_numbers = #tpu.dot_dimension_numbers<[1], [1], [0], [0], [0, 0, 1, 0], [], []>} : vector<128x128xf32>, vector<256x128xf32>, vector<128x256xf32> -> vector<128x256xf32>
    %15 = arith.mulf %5, %5 : vector<128x128xf32>
    %cst_7 = arith.constant dense<0.000000e+00> : vector<128xf32>
    %16 = vector.multi_reduction <add>, %15, %cst_7 [1] : vector<128x128xf32> to vector<128xf32>
    %17 = vector.shape_cast %16 : vector<128xf32> to vector<128x1xf32>
    %18 = vector.broadcast %17 : vector<128x1xf32> to vector<128x256xf32>
    %19 = vector.broadcast %13 : vector<1x256xf32> to vector<128x256xf32>
    %20 = arith.addf %18, %19 : vector<128x256xf32>
    %cst_8 = arith.constant 2.000000e+00 : f32
    %21 = vector.broadcast %cst_8 : f32 to vector<128x256xf32>
    %22 = arith.mulf %21, %14 : vector<128x256xf32>
    %23 = arith.subf %20, %22 : vector<128x256xf32>
    %cst_9 = arith.constant 0.000000e+00 : f32
    %24 = vector.broadcast %cst_9 : f32 to vector<128x256xf32>
    %25 = arith.cmpf ogt, %23, %24 : vector<128x256xf32>
    %26 = arith.andi %12, %25 : vector<128x256xi1>
    %cst_10 = arith.constant 1.000000e+00 : f32
    %27 = vector.broadcast %cst_10 : f32 to vector<128x256xf32>
    %28 = arith.select %26, %23, %27 : vector<128x256xi1>, vector<128x256xf32>
    %29 = math.sqrt %28 : vector<128x256xf32>
    %cst_11 = arith.constant 0.000000e+00 : f32
    %30 = vector.broadcast %cst_11 : f32 to vector<128x256xf32>
    %31 = arith.select %26, %29, %30 : vector<128x256xi1>, vector<128x256xf32>
    %c0_12 = arith.constant 0 : index
    %c0_13 = arith.constant 0 : index
    %32 = vector.load %arg7[%c0_12, %c0_13] : memref<128x256xf32, #tpu.memory_space<vmem>>, vector<128x256xf32>
    tpu.vector_store %arg7[%c0_12, %c0_13], %31 {strides = array<i32>} : memref<128x256xf32, #tpu.memory_space<vmem>>, vector<128x256xf32>,
    %c0_14 = arith.constant 0 : index
    %c0_15 = arith.constant 0 : index
    %33 = vector.load %arg4[%c0_14, %c0_15] : memref<1x256xf32, #tpu.memory_space<vmem>>, vector<1x256xf32>
    %cst_16 = arith.constant dense<0.000000e+00> : vector<128x256xf32>
    %34 = tpu.matmul %7, %3, %cst_16 {dimension_numbers = #tpu.dot_dimension_numbers<[1], [1], [0], [0], [0, 0, 1, 0], [], []>} : vector<128x128xf32>, vector<256x128xf32>, vector<128x256xf32> -> vector<128x256xf32>
    %35 = arith.mulf %7, %7 : vector<128x128xf32>
    %cst_17 = arith.constant dense<0.000000e+00> : vector<128xf32>
    %36 = vector.multi_reduction <add>, %35, %cst_17 [1] : vector<128x128xf32> to vector<128xf32>
    %37 = vector.shape_cast %36 : vector<128xf32> to vector<128x1xf32>
    %38 = vector.broadcast %37 : vector<128x1xf32> to vector<128x256xf32>
    %39 = vector.broadcast %33 : vector<1x256xf32> to vector<128x256xf32>
    %40 = arith.addf %38, %39 : vector<128x256xf32>
    %cst_18 = arith.constant 2.000000e+00 : f32
    %41 = vector.broadcast %cst_18 : f32 to vector<128x256xf32>
    %42 = arith.mulf %41, %34 : vector<128x256xf32>
    %43 = arith.subf %40, %42 : vector<128x256xf32>
    %cst_19 = arith.constant 0.000000e+00 : f32
    %44 = vector.broadcast %cst_19 : f32 to vector<128x256xf32>
    %45 = arith.cmpf ogt, %43, %44 : vector<128x256xf32>
    %46 = arith.andi %12, %45 : vector<128x256xi1>
    %cst_20 = arith.constant 1.000000e+00 : f32
    %47 = vector.broadcast %cst_20 : f32 to vector<128x256xf32>
    %48 = arith.select %46, %43, %47 : vector<128x256xi1>, vector<128x256xf32>
    %49 = math.sqrt %48 : vector<128x256xf32>
    %cst_21 = arith.constant 0.000000e+00 : f32
    %50 = vector.broadcast %cst_21 : f32 to vector<128x256xf32>
    %51 = arith.select %46, %49, %50 : vector<128x256xi1>, vector<128x256xf32>
    %c0_22 = arith.constant 0 : index
    %c0_23 = arith.constant 0 : index
    %52 = vector.load %arg8[%c0_22, %c0_23] : memref<128x256xf32, #tpu.memory_space<vmem>>, vector<128x256xf32>
    tpu.vector_store %arg8[%c0_22, %c0_23], %51 {strides = array<i32>} : memref<128x256xf32, #tpu.memory_space<vmem>>, vector<128x256xf32>,
    %c0_24 = arith.constant 0 : index
    %c0_25 = arith.constant 0 : index
    %53 = vector.load %arg5[%c0_24, %c0_25] : memref<128x128xf32, #tpu.memory_space<vmem>>, vector<128x128xf32>
    %cst_26 = arith.constant dense<0.000000e+00> : vector<128x128xf32>
    %54 = tpu.matmul %7, %53, %cst_26 {dimension_numbers = #tpu.dot_dimension_numbers<[1], [0], [0], [1], [0, 0, 1, 1], [], []>} : vector<128x128xf32>, vector<128x128xf32>, vector<128x128xf32> -> vector<128x128xf32>
    %c0_27 = arith.constant 0 : index
    %c0_28 = arith.constant 0 : index
    %55 = vector.load %arg6[%c0_27, %c0_28] : memref<1x128xf32, #tpu.memory_space<vmem>>, vector<1x128xf32>
    %56 = vector.broadcast %55 : vector<1x128xf32> to vector<128x128xf32>
    %57 = arith.addf %54, %56 : vector<128x128xf32>
    %58 = arith.subf %57, %5 : vector<128x128xf32>
    %59 = arith.mulf %58, %58 : vector<128x128xf32>
    %cst_29 = arith.constant dense<0.000000e+00> : vector<128xf32>
    %60 = vector.multi_reduction <add>, %59, %cst_29 [0] : vector<128x128xf32> to vector<128xf32>
    %61 = vector.shape_cast %60 : vector<128xf32> to vector<1x128xf32>
    %62 = vector.shape_cast %61 : vector<1x128xf32> to vector<1x1x128xf32>
    %c0_30 = arith.constant 0 : index
    %c0_31 = arith.constant 0 : index
    %c0_32 = arith.constant 0 : index
    %63 = vector.load %arg9[%c0_30, %c0_31, %c0_32] : memref<1x1x128xf32, #tpu.memory_space<vmem>>, vector<1x1x128xf32>
    tpu.vector_store %arg9[%c0_30, %c0_31, %c0_32], %62 {strides = array<i32>} : memref<1x1x128xf32, #tpu.memory_space<vmem>>, vector<1x1x128xf32>,
    return
  }
  func.func @transform_0(%arg0: i32) -> (i32, i32) {
    %c0_i32 = arith.constant 0 : i32
    %c0_i32_0 = arith.constant 0 : i32
    %c0_i32_1 = arith.constant 0 : i32
    return %c0_i32, %c0_i32_0 : i32, i32
  }
  func.func @transform_1(%arg0: i32) -> (i32, i32) {
    %c0_i32 = arith.constant 0 : i32
    %c0_i32_0 = arith.constant 0 : i32
    %c0_i32_1 = arith.constant 0 : i32
    return %c0_i32, %c0_i32_0 : i32, i32
  }
  func.func @transform_2(%arg0: i32) -> (i32, i32) {
    %c0_i32 = arith.constant 0 : i32
    %c0_i32_0 = arith.constant 0 : i32
    %c0_i32_1 = arith.constant 0 : i32
    return %c0_i32, %c0_i32_0 : i32, i32
  }
  func.func @transform_3(%arg0: i32) -> (i32, i32) {
    %c0_i32 = arith.constant 0 : i32
    %c0_i32_0 = arith.constant 0 : i32
    %c0_i32_1 = arith.constant 0 : i32
    return %c0_i32, %c0_i32_0 : i32, i32
  }
  func.func @transform_4(%arg0: i32) -> (i32, i32) {
    %c0_i32 = arith.constant 0 : i32
    %c0_i32_0 = arith.constant 0 : i32
    %c0_i32_1 = arith.constant 0 : i32
    return %c0_i32, %c0_i32_0 : i32, i32
  }
  func.func @transform_5(%arg0: i32) -> (i32, i32) {
    %c0_i32 = arith.constant 0 : i32
    %c0_i32_0 = arith.constant 0 : i32
    %c0_i32_1 = arith.constant 0 : i32
    return %c0_i32, %c0_i32_0 : i32, i32
  }
  func.func @transform_6(%arg0: i32) -> (i32, i32) {
    %c0_i32 = arith.constant 0 : i32
    %c0_i32_0 = arith.constant 0 : i32
    return %arg0, %c0_i32 : i32, i32
  }
  func.func @transform_7(%arg0: i32) -> (i32, i32) {
    %c0_i32 = arith.constant 0 : i32
    %c0_i32_0 = arith.constant 0 : i32
    return %arg0, %c0_i32 : i32, i32
  }
  func.func @transform_8(%arg0: i32) -> (i32, i32, i32) {
    %c0_i32 = arith.constant 0 : i32
    %c0_i32_0 = arith.constant 0 : i32
    %c0_i32_1 = arith.constant 0 : i32
    return %arg0, %c0_i32, %c0_i32_0 : i32, i32, i32
  }
}

</mosaic_0001>

<bundles_post_ra>
// kernel: custom-call.8
= control target key start
LH: loop header
LB: loop body
LE: loop exit
PB: predicated region body
PF: predicated region fallthrough
CT: control target
= control target key end

     0   :  { %s6_s0 = inlined_call_operand.vmem [shape: s32[256], index: 0, kind: output, shape index: {}]  }

// kernel: _geotop_losses.1
= control target key start
LH: loop header
LB: loop body
LE: loop exit
PB: predicated region body
PF: predicated region fallthrough
CT: control target
= control target key end

     0   :  { %s2765_s27 = smov 0   ;;  %s5381_s0 = inlined_call_operand.vmem [shape: f32[256,128], index: 0, kind: input, shape index: {}]   ;;  %s5382_s1 = inlined_call_operand.vmem [shape: f32[256,128], index: 1, kind: input, shape index: {}]   ;;  %s5383_s2 = inlined_call_operand.vmem [shape: f32[1,256], index: 2, kind: input, shape index: {}]   ;;  %s5384_s3 = inlined_call_operand.vmem [shape: f32[1,256], index: 3, kind: input, shape index: {}]   ;;  %s5385_s4 = inlined_call_operand.vmem [shape: f32[128,128], index: 4, kind: input, shape index: {}]   ;;  %s5386_s5 = inlined_call_operand.vmem [shape: f32[1,128], index: 5, kind: input, shape index: {}]   ;;  %s5387_s6 = inlined_call_operand.vmem [shape: f32[256,256], index: 6, kind: output, shape index: {0}]   ;;  %s5388_s7 = inlined_call_operand.vmem [shape: f32[256,256], index: 7, kind: output, shape index: {1}]   ;;  %s5389_s8 = inlined_call_operand.vmem [shape: f32[2,1,128], index: 8, kind: output, shape index: {2}]  }
   0x1 LB: > { %s2771_s28 = sadd.s32 4294967295, %s2718_s27   ;;  %p2219_p0 = scmp.ge.s32.totalorder %s2718_s27, 1  ;;  %s2718_s27 = sphi %s2765_s27, %s19_s27  }
   0x2   : > { %p257_p1 = scmp.lt.s32.totalorder %s2718_s27, 3 }
   0x4   : > { %p258_p2 = pnand %p2219_p0, %p257_p1 }
   0x6   : > { %261 = sbr.rel (%p258_p2) target bundleno = 543 (0x21f), region = 44 }
   0xd   : > { %v330_v0 = vld [vmem:[%s5381_s0 + $0x80] sm:$0xff]  ;;  %v331_v1 = vld [vmem:[%s5381_s0 + $0x88] sm:$0xff]  ;;  %v332_v11 = vld [vmem:[%s5381_s0 + $0x90] sm:$0xff]  ;;  %s2860_s23 = sshll.u32 %s2771_s28, 7  ;;  %p310_p4 = scmp.lt.s32.totalorder %s2771_s28, 1 }
   0xe   : > { %v362_v2 = vld [vmem:[%s5382_s1 + $0x80] sm:$0xff]  ;;  %v2448_v3 = vpack.c.bf16 %v331_v1, %v330_v0  ;;  %v363_v4 = vld [vmem:[%s5382_s1 + $0x88] sm:$0xff]  ;;  %v333_v13 = vld [vmem:[%s5381_s0 + $0x98] sm:$0xff]  ;;  %s2866_s26 = scalar_lea.vmem %s5381_s0, %s2860_s23  ;;  %s2872_s9 = scalar_lea.vmem %s5382_s1, %s2860_s23 }
   0xf   : > { %v314_v5 = vld [vmem:[%s5381_s0] sm:$0xff]  ;;  %v315_v6 = vld [vmem:[%s5381_s0 + $0x8] sm:$0xff]  ;;  %v2480_v7 = vpack.c.bf16 %v363_v4, %v362_v2  ;;  %v364_v14 = vld [vmem:[%s5382_s1 + $0x90] sm:$0xff]  ;;  %v2452_v16 = vpack.c.bf16 %v333_v13, %v332_v11 }
  0x10   : > { %v2450_v8 = vpack.c.bf16 %v315_v6, %v314_v5  ;;  %v346_v9 = vld [vmem:[%s5382_s1] sm:$0xff]  ;;  %v347_v10 = vld [vmem:[%s5382_s1 + $0x8] sm:$0xff]  ;;  %2449 = vmatprep.subr.bf16.mxu0 %v2448_v3  ;;  %v365_v15 = vld [vmem:[%s5382_s1 + $0x98] sm:$0xff] }
  0x11   : > { %v2482_v12 = vpack.c.bf16 %v347_v10, %v346_v9  ;;  %2481 = vmatprep.subr.bf16.mxu1 %v2480_v7  ;;  %v2484_v17 = vpack.c.bf16 %v365_v15, %v364_v14  ;;  %v316_v18 = vld [vmem:[%s5381_s0 + $0x10] sm:$0xff]  ;;  %v317_v19 = vld [vmem:[%s5381_s0 + $0x18] sm:$0xff]  ;;  %v334_v22 = vld [vmem:[%s5381_s0 + $0xa0] sm:$0xff] }
  0x12   : > { %2451 = vmatpush3.bf16.xpose.msra.mxu0 %v2450_v8  ;;  %v348_v20 = vld [vmem:[%s5382_s1 + $0x10] sm:$0xff]  ;;  %v349_v21 = vld [vmem:[%s5382_s1 + $0x18] sm:$0xff]  ;;  %v335_v23 = vld [vmem:[%s5381_s0 + $0xa8] sm:$0xff]  ;;  %v2454_v26 = vpack.c.bf16 %v317_v19, %v316_v18 }
  0x13   : > { %2483 = vmatpush3.bf16.xpose.msra.mxu1 %v2482_v12  ;;  %2453 = vmatprep.subr.bf16.mxu0 %v2452_v16  ;;  %v366_v24 = vld [vmem:[%s5382_s1 + $0xa0] sm:$0xff]  ;;  %v367_v25 = vld [vmem:[%s5382_s1 + $0xa8] sm:$0xff]  ;;  %v2486_v27 = vpack.c.bf16 %v349_v21, %v348_v20  ;;  %v2456_v28 = vpack.c.bf16 %v335_v23, %v334_v22  ;;  %v336_v34 = vld [vmem:[%s5381_s0 + $0xb0] sm:$0xff] }
  0x14   : > { %2485 = vmatprep.subr.bf16.mxu1 %v2484_v17  ;;  %v2488_v29 = vpack.c.bf16 %v367_v25, %v366_v24  ;;  %v318_v30 = vld [vmem:[%s5381_s0 + $0x20] sm:$0xff]  ;;  %v319_v31 = vld [vmem:[%s5381_s0 + $0x28] sm:$0xff]  ;;  %v337_v35 = vld [vmem:[%s5381_s0 + $0xb8] sm:$0xff] }
  0x15   : > { %v350_v32 = vld [vmem:[%s5382_s1 + $0x20] sm:$0xff]  ;;  %v351_v33 = vld [vmem:[%s5382_s1 + $0x28] sm:$0xff]  ;;  %v368_v36 = vld [vmem:[%s5382_s1 + $0xb0] sm:$0xff]  ;;  %v2458_v38 = vpack.c.bf16 %v319_v31, %v318_v30  ;;  %v2460_v40 = vpack.c.bf16 %v337_v35, %v336_v34 }
  0x16   : > { %v369_v37 = vld [vmem:[%s5382_s1 + $0xb8] sm:$0xff]  ;;  %v2490_v39 = vpack.c.bf16 %v351_v33, %v350_v32  ;;  %v320_v42 = vld [vmem:[%s5381_s0 + $0x30] sm:$0xff]  ;;  %v2887_v46 = vld [vmem:[%s2866_s26] sm:$0xff] }
  0x17   : > { %v2492_v41 = vpack.c.bf16 %v369_v37, %v368_v36  ;;  %v321_v43 = vld [vmem:[%s5381_s0 + $0x38] sm:$0xff]  ;;  %v352_v44 = vld [vmem:[%s5382_s1 + $0x30] sm:$0xff]  ;;  %v2890_v47 = vld [vmem:[%s2872_s9] sm:$0xff]  ;;  %2264 = vmatprep.mubr.f32.mxu0 %v2887_v46  ;;  %v643_v51 = vmul.f32 %v2887_v46, %v2887_v46 }
  0x18   : > { %v353_v45 = vld [vmem:[%s5382_s1 + $0x38] sm:$0xff]  ;;  %v338_v48 = vld [vmem:[%s5381_s0 + $0xc0] sm:$0xff]  ;;  %v339_v49 = vld [vmem:[%s5381_s0 + $0xc8] sm:$0xff]  ;;  %2328 = vmatprep.mubr.f32.mxu1 %v2890_v47  ;;  %v2462_v55 = vpack.c.bf16 %v321_v43, %v320_v42 }
  0x19   : > { %v370_v50 = vld [vmem:[%s5382_s1 + $0xc0] sm:$0xff]  ;;  %v371_v52 = vld [vmem:[%s5382_s1 + $0xc8] sm:$0xff]  ;;  %v2912_v54 = vld [vmem:[%s2866_s26 + $0x10] sm:$0xff]  ;;  %659 = vadd.xlane.f32.xlu0 %v643_v51  ;;  %v2494_v58 = vpack.c.bf16 %v353_v45, %v352_v44  ;;  %v2464_v59 = vpack.c.bf16 %v339_v49, %v338_v48 }
  0x1a   : > { %2455 = vmatpush3.bf16.xpose.msra.mxu0 %v2454_v26  ;;  %v2909_v53 = vld [vmem:[%s2866_s26 + $0x8] sm:$0xff]  ;;  %v645_v56 = vmul.f32 %v2912_v54, %v2912_v54  ;;  %v2919_v60 = vld [vmem:[%s2866_s26 + $0x18] sm:$0xff]  ;;  %v2496_v61 = vpack.c.bf16 %v371_v52, %v370_v50  ;;  %v2924_v63 = vld [vmem:[%s2866_s26 + $0x20] sm:$0xff] }
  0x1b   : > { %2487 = vmatpush3.bf16.xpose.msra.mxu1 %v2486_v27  ;;  %2457 = vmatprep.subr.bf16.mxu0 %v2456_v28  ;;  %v644_v57 = vmul.f32 %v2909_v53, %v2909_v53  ;;  %v646_v62 = vmul.f32 %v2919_v60, %v2919_v60  ;;  %v322_v0 = vld [vmem:[%s5381_s0 + $0x40] sm:$0xff]  ;;  %v647_v1 = vmul.f32 %v2924_v63, %v2924_v63  ;;  %v323_v2 = vld [vmem:[%s5381_s0 + $0x48] sm:$0xff]  ;;  %v340_v6 = vld [vmem:[%s5381_s0 + $0xd0] sm:$0xff] }
  0x1c   : > { %2489 = vmatprep.subr.bf16.mxu1 %v2488_v29  ;;  %663 = vadd.xlane.f32.xlu1 %v645_v56  ;;  %v354_v3 = vld [vmem:[%s5382_s1 + $0x40] sm:$0xff]  ;;  %v2938_v4 = vld [vmem:[%s2866_s26 + $0x28] sm:$0xff]  ;;  %v341_v7 = vld [vmem:[%s5381_s0 + $0xd8] sm:$0xff]  ;;  %v2466_v12 = vpack.c.bf16 %v323_v2, %v322_v0  ;;  %v1344_v2 = vmul.f32 %v2890_v47, %v2890_v47 }
  0x1d   : > { %661 = vadd.xlane.f32.xlu0 %v644_v57  ;;  %v355_v5 = vld [vmem:[%s5382_s1 + $0x48] sm:$0xff]  ;;  %v648_v8 = vmul.f32 %v2938_v4, %v2938_v4  ;;  %v372_v9 = vld [vmem:[%s5382_s1 + $0xd0] sm:$0xff]  ;;  %v373_v10 = vld [vmem:[%s5382_s1 + $0xd8] sm:$0xff]  ;;  %v2468_v15 = vpack.c.bf16 %v341_v7, %v340_v6 }
  0x1e   : > { %v2958_v11 = vld [vmem:[%s2866_s26 + $0x30] sm:$0xff]  ;;  %v2498_v14 = vpack.c.bf16 %v355_v5, %v354_v3  ;;  %v2963_v16 = vld [vmem:[%s2866_s26 + $0x38] sm:$0xff]  ;;  %v2500_v17 = vpack.c.bf16 %v373_v10, %v372_v9  ;;  %v2968_v19 = vld [vmem:[%s2866_s26 + $0x40] sm:$0xff] }
  0x1f   : > { %v649_v13 = vmul.f32 %v2958_v11, %v2958_v11  ;;  %v650_v18 = vmul.f32 %v2963_v16, %v2963_v16  ;;  %v324_v20 = vld [vmem:[%s5381_s0 + $0x50] sm:$0xff]  ;;  %v651_v21 = vmul.f32 %v2968_v19, %v2968_v19  ;;  %v325_v22 = vld [vmem:[%s5381_s0 + $0x58] sm:$0xff]  ;;  %v2982_v24 = vld [vmem:[%s2866_s26 + $0x48] sm:$0xff] }
  0x20   : > { %665 = vadd.xlane.f32.xlu1 %v646_v62  ;;  %v356_v23 = vld [vmem:[%s5382_s1 + $0x50] sm:$0xff]  ;;  %v357_v25 = vld [vmem:[%s5382_s1 + $0x58] sm:$0xff]  ;;  %v342_v26 = vld [vmem:[%s5381_s0 + $0xe0] sm:$0xff]  ;;  %v652_v28 = vmul.f32 %v2982_v24, %v2982_v24  ;;  %v2470_v32 = vpack.c.bf16 %v325_v22, %v324_v20 }
  0x21   : > { %667 = vadd.xlane.f32.xlu0 %v647_v1  ;;  %v343_v27 = vld [vmem:[%s5381_s0 + $0xe8] sm:$0xff]  ;;  %v374_v29 = vld [vmem:[%s5382_s1 + $0xe0] sm:$0xff]  ;;  %v3002_v31 = vld [vmem:[%s2866_s26 + $0x50] sm:$0xff]  ;;  %v2502_v34 = vpack.c.bf16 %v357_v25, %v356_v23 }
  0x22   : > { %2459 = vmatpush3.bf16.xpose.msra.mxu0 %v2458_v38  ;;  %v375_v30 = vld [vmem:[%s5382_s1 + $0xe8] sm:$0xff]  ;;  %v653_v33 = vmul.f32 %v3002_v31, %v3002_v31  ;;  %v2472_v35 = vpack.c.bf16 %v343_v27, %v342_v26  ;;  %v3007_v36 = vld [vmem:[%s2866_s26 + $0x58] sm:$0xff]  ;;  %v358_v43 = vld [vmem:[%s5382_s1 + $0x60] sm:$0xff] }
  0x23   : > { %2491 = vmatpush3.bf16.xpose.msra.mxu1 %v2490_v39  ;;  %2461 = vmatprep.subr.bf16.mxu0 %v2460_v40  ;;  %v2504_v37 = vpack.c.bf16 %v375_v30, %v374_v29  ;;  %v654_v38 = vmul.f32 %v3007_v36, %v3007_v36  ;;  %v3012_v39 = vld [vmem:[%s2866_s26 + $0x60] sm:$0xff]  ;;  %v327_v42 = vld [vmem:[%s5381_s0 + $0x68] sm:$0xff]  ;;  %v344_v48 = vld [vmem:[%s5381_s0 + $0xf0] sm:$0xff] }
  0x24   : > { %2493 = vmatprep.subr.bf16.mxu1 %v2492_v41  ;;  %669 = vadd.xlane.f32.xlu1 %v648_v8  ;;  %v326_v40 = vld [vmem:[%s5381_s0 + $0x60] sm:$0xff]  ;;  %v655_v41 = vmul.f32 %v3012_v39, %v3012_v39  ;;  %v3026_v44 = vld [vmem:[%s2866_s26 + $0x68] sm:$0xff]  ;;  %v345_v49 = vld [vmem:[%s5381_s0 + $0xf8] sm:$0xff] }
  0x25   : > { %671 = vadd.xlane.f32.xlu0 %v649_v13  ;;  %v359_v45 = vld [vmem:[%s5382_s1 + $0x68] sm:$0xff]  ;;  %v656_v50 = vmul.f32 %v3026_v44, %v3026_v44  ;;  %v376_v51 = vld [vmem:[%s5382_s1 + $0xf0] sm:$0xff]  ;;  %v377_v52 = vld [vmem:[%s5382_s1 + $0xf8] sm:$0xff]  ;;  %v2474_v56 = vpack.c.bf16 %v327_v42, %v326_v40 }
  0x26   : > { %v2508_v62 = vpack.c.bf16 %v377_v52, %v376_v51  ;;  %v328_v1 = vld [vmem:[%s5381_s0 + $0x70] sm:$0xff]  ;;  %v329_v3 = vld [vmem:[%s5381_s0 + $0x78] sm:$0xff]  ;;  %v3067_v6 = vld [vmem:[%s2872_s9 + $0x8] sm:$0xff] }
  0x27   : > { %v360_v5 = vld [vmem:[%s5382_s1 + $0x70] sm:$0xff]  ;;  %v361_v7 = vld [vmem:[%s5382_s1 + $0x78] sm:$0xff]  ;;  %v1883_v8 = vld [vmem:[%s5385_s4] sm:$0xff]  ;;  %v1345_v10 = vmul.f32 %v3067_v6, %v3067_v6  ;;  %v2478_v13 = vpack.c.bf16 %v329_v3, %v328_v1 }
  0x28   : > { %673 = vadd.xlane.f32.xlu1 %v650_v18  ;;  %v1884_v9 = vld [vmem:[%s5385_s4 + $0x8] sm:$0xff]  ;;  %v3086_v18 = vld [vmem:[%s2872_s9 + $0x18] sm:$0xff]  ;;  %v1885_v26 = vld [vmem:[%s5385_s4 + $0x10] sm:$0xff] }
  0x29   : > { %675 = vadd.xlane.f32.xlu0 %v651_v21  ;;  %v1347_v20 = vmul.f32 %v3086_v18, %v3086_v18  ;;  %v3091_v21 = vld [vmem:[%s2872_s9 + $0x20] sm:$0xff]  ;;  %v3096_v23 = vld [vmem:[%s2872_s9 + $0x28] sm:$0xff]  ;;  %v1886_v27 = vld [vmem:[%s5385_s4 + $0x18] sm:$0xff] }
  0x2a   : > { %2463 = vmatpush3.bf16.xpose.msra.mxu0 %v2462_v55  ;;  %v3046_v55 = vld [vmem:[%s2866_s26 + $0x70] sm:$0xff]  ;;  %v1348_v22 = vmul.f32 %v3091_v21, %v3091_v21  ;;  %v1349_v25 = vmul.f32 %v3096_v23, %v3096_v23  ;;  %v1887_v29 = vld [vmem:[%s5385_s4 + $0x20] sm:$0xff]  ;;  %v1888_v30 = vld [vmem:[%s5385_s4 + $0x28] sm:$0xff] }
  0x2b   : > { %2495 = vmatpush3.bf16.xpose.msra.mxu1 %v2494_v58  ;;  %2465 = vmatprep.subr.bf16.mxu0 %v2464_v59  ;;  %v657_v57 = vmul.f32 %v3046_v55, %v3046_v55  ;;  %v2506_v58 = vpack.c.bf16 %v359_v45, %v358_v43  ;;  %v2476_v59 = vpack.c.bf16 %v345_v49, %v344_v48  ;;  %v3157_v42 = vld [vmem:[%s2872_s9 + $0x30] sm:$0xff]  ;;  %v1898_v45 = vld [vmem:[%s5385_s4 + $0x78] sm:$0xff]  ;;  %v3177_v49 = vld [vmem:[%s2872_s9 + $0x40] sm:$0xff] }
  0x2c   : > { %2497 = vmatprep.subr.bf16.mxu1 %v2496_v61  ;;  %677 = vadd.xlane.f32.xlu1 %v652_v28  ;;  %v3051_v61 = vld [vmem:[%s2866_s26 + $0x78] sm:$0xff]  ;;  %v2516_v28 = vpack.c.bf16 %v1886_v27, %v1885_v26  ;;  %v1897_v43 = vld [vmem:[%s5385_s4 + $0x70] sm:$0xff]  ;;  %v405_v51 = vld [vmem:[%s2872_s9 + $0x48] sm:$0xff]  ;;  %v1352_v52 = vmul.f32 %v3177_v49, %v3177_v49 }
  0x2d   : > { %679 = vadd.xlane.f32.xlu0 %v653_v33  ;;  %v658_v0 = vmul.f32 %v3051_v61, %v3051_v61  ;;  %v1890_v33 = vld [vmem:[%s5385_s4 + $0x38] sm:$0xff] }
  0x2e   : > { %v3170_v48 = vld [vmem:[%s2872_s9 + $0x38] sm:$0xff] }
  0x30   : > { %681 = vadd.xlane.f32.xlu1 %v654_v38  ;;  %v1894_v38 = vld [vmem:[%s5385_s4 + $0x58] sm:$0xff] }
  0x31   : > { %683 = vadd.xlane.f32.xlu0 %v655_v41  ;;  %v1896_v41 = vld [vmem:[%s5385_s4 + $0x68] sm:$0xff] }
  0x32   : > { %2467 = vmatpush3.bf16.xpose.msra.mxu0 %v2466_v12  ;;  %v3081_v12 = vld [vmem:[%s2872_s9 + $0x10] sm:$0xff] }
  0x33   : > { %2499 = vmatpush3.bf16.xpose.msra.mxu1 %v2498_v14  ;;  %2469 = vmatprep.subr.bf16.mxu0 %v2468_v15  ;;  %v1346_v14 = vmul.f32 %v3081_v12, %v3081_v12  ;;  %v2510_v15 = vpack.c.bf16 %v361_v7, %v360_v5  ;;  %v481_v7 = vld [vmem:[%s5383_s2] sm:$0x3] }
  0x34   : > { %2501 = vmatprep.subr.bf16.mxu1 %v2500_v17  ;;  %685 = vadd.xlane.f32.xlu1 %v656_v50  ;;  %v2512_v17 = vpack.c.bf16 %v1884_v9, %v1883_v8  ;;  %v1350_v50 = vmul.f32 %v3157_v42, %v3157_v42 }
  0x35   : > { %687 = vadd.xlane.f32.xlu0 %v657_v57  ;;  %v407_v57 = vld [vmem:[%s2872_s9 + $0x58] sm:$0xff] }
  0x38   : > { %689 = vadd.xlane.f32.xlu1 %v658_v0 }
  0x39   : > { %1360 = vadd.xlane.f32.xlu0 %v1344_v2  ;;  %v411_v2 = vld [vmem:[%s2872_s9 + $0x78] sm:$0xff] }
  0x3a   : > { %2471 = vmatpush3.bf16.xpose.msra.mxu0 %v2470_v32  ;;  %v2520_v32 = vpack.c.bf16 %v1888_v30, %v1887_v29  ;;  %v1359_v5 = vmul.f32 %v411_v2, %v411_v2 }
  0x3b   : > { %2503 = vmatpush3.bf16.xpose.msra.mxu1 %v2502_v34  ;;  %2473 = vmatprep.subr.bf16.mxu0 %v2472_v35  ;;  %v1892_v35 = vld [vmem:[%s5385_s4 + $0x48] sm:$0xff] }
  0x3c   : > { %2505 = vmatprep.subr.bf16.mxu1 %v2504_v37  ;;  %1362 = vadd.xlane.f32.xlu1 %v1345_v10 }
  0x3d   : > { %1364 = vadd.xlane.f32.xlu0 %v1346_v14 }
  0x40   : > { %1366 = vadd.xlane.f32.xlu1 %v1347_v20 }
  0x41   : > { %1368 = vadd.xlane.f32.xlu0 %v1348_v22 }
  0x42   : > { %2475 = vmatpush3.bf16.xpose.msra.mxu0 %v2474_v56  ;;  %v406_v56 = vld [vmem:[%s2872_s9 + $0x50] sm:$0xff] }
  0x43   : > { %2507 = vmatpush3.bf16.xpose.msra.mxu1 %v2506_v58  ;;  %2477 = vmatprep.subr.bf16.mxu0 %v2476_v59  ;;  %v1354_v58 = vmul.f32 %v406_v56, %v406_v56  ;;  %v1355_v59 = vmul.f32 %v407_v57, %v407_v57 }
  0x44   : > { %2509 = vmatprep.subr.bf16.mxu1 %v2508_v62  ;;  %1370 = vadd.xlane.f32.xlu1 %v1349_v25  ;;  %v409_v62 = vld [vmem:[%s2872_s9 + $0x68] sm:$0xff] }
  0x45   : > { %1372 = vadd.xlane.f32.xlu0 %v1350_v50  ;;  %v1357_v1 = vmul.f32 %v409_v62, %v409_v62  ;;  %v1182_v50 = vld [vmem:[%s5384_s3] sm:$0x3] }
  0x49   : > { %1376 = vadd.xlane.f32.xlu0 %v1352_v52 }
  0x4a   : > { %2479 = vmatpush3.bf16.xpose.msra.mxu0 %v2478_v13 }
  0x4b   : > { %2511 = vmatpush3.bf16.xpose.msra.mxu1 %v2510_v15  ;;  %2513 = vmatprep.subr.bf16.mxu0 %v2512_v17 }
  0x4c   : > { %2544 = vmatprep.subr.bf16.mxu1 %v2512_v17 }
  0x4d   : > { %1380 = vadd.xlane.f32.xlu0 %v1354_v58 }
  0x51   : > { %2265 = vmatmul.mubr.f32.vlgmr.msra.gmra.mrb[0].mxu0 %v2887_v46  ;;  %v1889_v46 = vld [vmem:[%s5385_s4 + $0x30] sm:$0xff] }
  0x52   : > { %2329 = vmatmul.mubr.f32.vlgmr.msra.gmra.mrb[0].mxu1 %v2890_v47  ;;  %2515 = vmatpush3.bf16.msra.mxu0 %v2512_v17  ;;  %v2524_v34 = vpack.c.bf16 %v1890_v33, %v1889_v46 }
  0x53   : > { %2266 = vmatprep.mubr.f32.mxu0 %v2909_v53  ;;  %2330 = vmatprep.mubr.f32.mxu1 %v3067_v6 }
  0x54   : > { %2517 = vmatprep.subr.bf16.mxu0 %v2516_v28  ;;  %2552 = vmatpush3.bf16.msra.mxu1 %v2512_v17 }
  0x55   : > { %2267 = vmatmul.mubr.f32.gmra.mrb[2].mxu0 %v2909_v53  ;;  %2545 = vmatprep.subr.bf16.mxu1 %v2516_v28  ;;  %v1891_v53 = vld [vmem:[%s5385_s4 + $0x40] sm:$0xff] }
  0x56   : > { %2331 = vmatmul.mubr.f32.gmra.mrb[2].mxu1 %v3067_v6  ;;  %2268 = vmatprep.mubr.f32.mxu0 %v2912_v54  ;;  %v2528_v37 = vpack.c.bf16 %v1892_v35, %v1891_v53 }
  0x57   : > { %2332 = vmatprep.mubr.f32.mxu1 %v3081_v12  ;;  %2519 = vmatpush3.bf16.msra.mxu0 %v2516_v28 }
  0x58   : > { %2521 = vmatprep.subr.bf16.mxu0 %v2520_v32  ;;  %2553 = vmatpush3.bf16.msra.mxu1 %v2516_v28 }
  0x59   : > { %2269 = vmatmul.mubr.f32.gmra.mrb[4].mxu0 %v2912_v54  ;;  %2546 = vmatprep.subr.bf16.mxu1 %v2520_v32  ;;  %v1893_v54 = vld [vmem:[%s5385_s4 + $0x50] sm:$0xff] }
  0x5a   : > { %2333 = vmatmul.mubr.f32.gmra.mrb[4].mxu1 %v3081_v12  ;;  %2270 = vmatprep.mubr.f32.mxu0 %v2919_v60  ;;  %v2532_v40 = vpack.c.bf16 %v1894_v38, %v1893_v54 }
  0x5b   : > { %2334 = vmatprep.mubr.f32.mxu1 %v3086_v18  ;;  %2523 = vmatpush3.bf16.msra.mxu0 %v2520_v32 }
  0x5c   : > { %2525 = vmatprep.subr.bf16.mxu0 %v2524_v34  ;;  %2554 = vmatpush3.bf16.msra.mxu1 %v2520_v32 }
  0x5d   : > { %2271 = vmatmul.mubr.f32.gmra.mrb[6].mxu0 %v2919_v60  ;;  %2547 = vmatprep.subr.bf16.mxu1 %v2524_v34  ;;  %v1895_v60 = vld [vmem:[%s5385_s4 + $0x60] sm:$0xff] }
  0x5e   : > { %2335 = vmatmul.mubr.f32.gmra.mrb[6].mxu1 %v3086_v18  ;;  %2272 = vmatprep.mubr.f32.mxu0 %v2924_v63 }
  0x5f   : > { %2336 = vmatprep.mubr.f32.mxu1 %v3091_v21  ;;  %2527 = vmatpush3.bf16.msra.mxu0 %v2524_v34 }
  0x60   : > { %2529 = vmatprep.subr.bf16.mxu0 %v2528_v37  ;;  %2555 = vmatpush3.bf16.msra.mxu1 %v2524_v34 }
  0x61   : > { %2273 = vmatmul.mubr.f32.gmra.mrb[8].mxu0 %v2924_v63  ;;  %2548 = vmatprep.subr.bf16.mxu1 %v2528_v37  ;;  %v2536_v63 = vpack.c.bf16 %v1896_v41, %v1895_v60 }
  0x62   : > { %2337 = vmatmul.mubr.f32.gmra.mrb[8].mxu1 %v3091_v21  ;;  %2274 = vmatprep.mubr.f32.mxu0 %v2938_v4 }
  0x63   : > { %2338 = vmatprep.mubr.f32.mxu1 %v3096_v23  ;;  %2531 = vmatpush3.bf16.msra.mxu0 %v2528_v37 }
  0x64   : > { %2533 = vmatprep.subr.bf16.mxu0 %v2532_v40  ;;  %2556 = vmatpush3.bf16.msra.mxu1 %v2528_v37 }
  0x65   : > { %2275 = vmatmul.mubr.f32.gmra.mrb[10].mxu0 %v2938_v4  ;;  %2549 = vmatprep.subr.bf16.mxu1 %v2532_v40  ;;  %v2540_v4 = vpack.c.bf16 %v1898_v45, %v1897_v43 }
  0x66   : > { %2339 = vmatmul.mubr.f32.gmra.mrb[10].mxu1 %v3096_v23  ;;  %2276 = vmatprep.mubr.f32.mxu0 %v2958_v11 }
  0x67   : > { %2340 = vmatprep.mubr.f32.mxu1 %v3157_v42  ;;  %2535 = vmatpush3.bf16.msra.mxu0 %v2532_v40 }
  0x68   : > { %2537 = vmatprep.subr.bf16.mxu0 %v2536_v63  ;;  %2557 = vmatpush3.bf16.msra.mxu1 %v2532_v40 }
  0x69   : > { %2277 = vmatmul.mubr.f32.gmra.mrb[12].mxu0 %v2958_v11  ;;  %2550 = vmatprep.subr.bf16.mxu1 %v2536_v63  ;;  %v1351_v11 = vmul.f32 %v3170_v48, %v3170_v48 }
  0x6a   : > { %2341 = vmatmul.mubr.f32.gmra.mrb[12].mxu1 %v3157_v42  ;;  %2278 = vmatprep.mubr.f32.mxu0 %v2963_v16 }
  0x6b   : > { %2342 = vmatprep.mubr.f32.mxu1 %v3170_v48  ;;  %2539 = vmatpush3.bf16.msra.mxu0 %v2536_v63 }
  0x6c   : > { %2541 = vmatprep.subr.bf16.mxu0 %v2540_v4  ;;  %2558 = vmatpush3.bf16.msra.mxu1 %v2536_v63 }
  0x6d   : > { %2279 = vmatmul.mubr.f32.gmra.mrb[14].mxu0 %v2963_v16  ;;  %2551 = vmatprep.subr.bf16.mxu1 %v2540_v4  ;;  %v1353_v16 = vmul.f32 %v405_v51, %v405_v51 }
  0x6e   : > { %2343 = vmatmul.mubr.f32.gmra.mrb[14].mxu1 %v3170_v48  ;;  %2280 = vmatprep.mubr.f32.mxu0 %v2968_v19 }
  0x6f   : > { %2344 = vmatprep.mubr.f32.mxu1 %v3177_v49  ;;  %2543 = vmatpush3.bf16.msra.mxu0 %v2540_v4 }
  0x70   : > { %2559 = vmatpush3.bf16.msra.mxu1 %v2540_v4  ;;  %1374 = vadd.xlane.f32.xlu1 %v1351_v11  ;;  %v3273_v4 = vstv %s2860_s23  ;;  %s2220_s23 = sshll.u32 %s2771_s28, 4  ;;  %s5698_s28 = smov (!%p310_p4, %s2771_s28), 1 }
  0x71   : > { %2281 = vmatmul.mubr.f32.gmra.mrb[16].mxu0 %v2968_v19  ;;  %v408_v19 = vld [vmem:[%s2872_s9 + $0x60] sm:$0xff]  ;;  %5422 = vst [vmem:[#allocation23_spill] sm:$0xff] %v3273_v4  ;;  %p3464_p3 = scmp.lt.s32.totalorder %s2220_s23, 31  ;;  %s312_s10 = scalar_lea.vmem %s5389_s8, %s5698_s28 }
  0x72   : > { %2345 = vmatmul.mubr.f32.gmra.mrb[16].mxu1 %v3177_v49  ;;  %2282 = vmatprep.mubr.f32.mxu0 %v2982_v24  ;;  %v1356_v0 = vmul.f32 %v408_v19, %v408_v19 }
  0x73   : > { %2346 = vmatprep.mubr.f32.mxu1 %v405_v51  ;;  %s5696_s23 = smov (!%p3464_p3, %s2220_s23), 31 }
  0x74   : > { %1378 = vadd.xlane.f32.xlu1 %v1353_v16  ;;  %1384 = vadd.xlane.f32.xlu0 %v1356_v0  ;;  %s2230_s16 = sshll.u32 %s5696_s23, 4 }
  0x75   : > { %2283 = vmatmul.mubr.f32.gmra.mrb[18].mxu0 %v2982_v24  ;;  %v410_v24 = vld [vmem:[%s2872_s9 + $0x70] sm:$0xff]  ;;  %s3599_s19 = scalar_lea.vmem %s5387_s6, %s2230_s16  ;;  %s3628_s22 = scalar_lea.vmem %s5388_s7, %s2230_s16 }
  0x76   : > { %2347 = vmatmul.mubr.f32.gmra.mrb[18].mxu1 %v405_v51  ;;  %2284 = vmatprep.mubr.f32.mxu0 %v3002_v31  ;;  %v1358_v3 = vmul.f32 %v410_v24, %v410_v24 }
  0x77   : > { %2348 = vmatprep.mubr.f32.mxu1 %v406_v56 }
  0x78   : > { %1382 = vadd.xlane.f32.xlu1 %v1355_v59  ;;  %1388 = vadd.xlane.f32.xlu0 %v1358_v3 }
  0x79   : > { %2285 = vmatmul.mubr.f32.gmra.mrb[20].mxu0 %v3002_v31 }
  0x7a   : > { %2349 = vmatmul.mubr.f32.gmra.mrb[20].mxu1 %v406_v56  ;;  %2286 = vmatprep.mubr.f32.mxu0 %v3007_v36 }
  0x7b   : > { %2350 = vmatprep.mubr.f32.mxu1 %v407_v57 }
  0x7c   : > { %1386 = vadd.xlane.f32.xlu1 %v1357_v1 }
  0x7d   : > { %2287 = vmatmul.mubr.f32.gmra.mrb[22].mxu0 %v3007_v36 }
  0x7e   : > { %2351 = vmatmul.mubr.f32.gmra.mrb[22].mxu1 %v407_v57  ;;  %2288 = vmatprep.mubr.f32.mxu0 %v3012_v39 }
  0x7f   : > { %2352 = vmatprep.mubr.f32.mxu1 %v408_v19 }
  0x80   : > { %1390 = vadd.xlane.f32.xlu1 %v1359_v5 }
  0x81   : > { %2289 = vmatmul.mubr.f32.gmra.mrb[24].mxu0 %v3012_v39 }
  0x82   : > { %2353 = vmatmul.mubr.f32.gmra.mrb[24].mxu1 %v408_v19  ;;  %2290 = vmatprep.mubr.f32.mxu0 %v3026_v44 }
  0x83   : > { %2354 = vmatprep.mubr.f32.mxu1 %v409_v62 }
  0x85   : > { %2291 = vmatmul.mubr.f32.gmra.mrb[26].mxu0 %v3026_v44 }
  0x86   : > { %2355 = vmatmul.mubr.f32.gmra.mrb[26].mxu1 %v409_v62  ;;  %2292 = vmatprep.mubr.f32.mxu0 %v3046_v55 }
  0x87   : > { %2356 = vmatprep.mubr.f32.mxu1 %v410_v24 }
  0x89   : > { %2293 = vmatmul.mubr.f32.gmra.mrb[28].mxu0 %v3046_v55 }
  0x8a   : > { %2357 = vmatmul.mubr.f32.gmra.mrb[28].mxu1 %v410_v24  ;;  %2294 = vmatprep.mubr.f32.mxu0 %v3051_v61 }
  0x8b   : > { %2358 = vmatprep.mubr.f32.mxu1 %v411_v2 }
  0x8d   : > { %2295 = vmatmul.mubr.f32.gmra.mrb[30].mxu0 %v3051_v61 }
  0x8e   : > { %2359 = vmatmul.mubr.f32.gmra.mrb[30].mxu1 %v411_v2  ;;  %2424 = vmatprep.mubr.f32.mxu0 %v2890_v47  ;;  %v412_v47 = vlaneseq }
  0x8f   : > { %2436 = vmatprep.mubr.f32.mxu1 %v3177_v49 }
  0x90   : > { %v3221_v39 = vshrl.u32 %v412_v47, 7  ;;  %v3275_v49 = vand.u32 127, %v412_v47 }
  0x91   : > { %2425 = vmatmul.mubr.f32.vlgmr.msra.gmra.mrb[32].mxu0 %v3067_v6 }
  0x92   : > { %2427 = vmatprep.mubr.f32.mxu0 %v3081_v12  ;;  %2437 = vmatmul.mubr.f32.vlgmr.msra.gmra.mrb[32].mxu1 %v405_v51  ;;  %5401 = vst [vmem:[#allocation2_spill] sm:$0xff] %v3221_v39  ;;  %v694_v61 = vsub.s32 0, %v3221_v39  ;;  %v698_v6 = vsub.s32 1, %v3221_v39  ;;  %v414_v11 = vadd.s32 8, %v3221_v39  ;;  %v415_v52 = vadd.s32 16, %v3221_v39 }
  0x93   : > { %2439 = vmatprep.mubr.f32.mxu1 %v406_v56  ;;  %v3284_v16 = vadd.s32 %v3273_v4, %v3221_v39  ;;  %v3289_v58 = vadd.s32 128, %v3275_v49  ;;  %v417_v3 = vadd.s32 32, %v3221_v39 }
  0x94   : > { %v695_v10 = vrot.slane %v481_v7, %v694_v61  ;;  %v699_v12 = vrot.slane %v481_v7, %v698_v6  ;;  %v3286_v56 = vrot.slane %v1182_v50, %v694_v61  ;;  %v3291_v59 = vrot.slane %v1182_v50, %v698_v6 }
  0x95   : > { %2428 = vmatmul.mubr.f32.gmra.mrb[34].mxu0 %v3086_v18  ;;  %v3307_v6 = vadd.s32 %v3273_v4, %v415_v52  ;;  %vm449_vm0 = vcmp.ne.s32.totalorder %v3284_v16, %v3275_v49  ;;  %vm450_vm1 = vcmp.ne.s32.totalorder %v3284_v16, %v3289_v58 }
  0x96   : > { %2430 = vmatprep.mubr.f32.mxu0 %v3091_v21  ;;  %2440 = vmatmul.mubr.f32.gmra.mrb[34].mxu1 %v407_v57  ;;  %5423 = vst [vmem:[#allocation24_spill] sm:$0xff] %v3291_v59 }
  0x97   : > { %2442 = vmatprep.mubr.f32.mxu1 %v408_v19  ;;  %v3294_v19 = vadd.s32 %v3273_v4, %v414_v11  ;;  %vm453_vm13 = vcmp.ne.s32.totalorder %v3307_v6, %v3275_v49 }
  0x99   : > { %2431 = vmatmul.mubr.f32.gmra.mrb[36].mxu0 %v3096_v23  ;;  %vm451_vm2 = vcmp.ne.s32.totalorder %v3294_v19, %v3275_v49  ;;  %vm452_vm4 = vcmp.ne.s32.totalorder %v3294_v19, %v3289_v58 }
  0x9a   : > { %2433 = vmatprep.mubr.f32.mxu0 %v3157_v42  ;;  %2443 = vmatmul.mubr.f32.gmra.mrb[36].mxu1 %v409_v62  ;;  %v416_v62 = vadd.s32 24, %v3221_v39 }
  0x9b   : > { %2445 = vmatprep.mubr.f32.mxu1 %v410_v24 }
  0x9d   : > { %2434 = vmatmul.mubr.f32.gmra.mrb[38].mxu0 %v3170_v48 }
  0x9e   : > { %2446 = vmatmul.mubr.f32.gmra.mrb[38].mxu1 %v411_v2 }
  0xa6   : > { %v660_v31 = vpop.xlane.xlu0 %659 }
  0xa7   : > { %v702_v1 = vadd.f32 %v695_v10, %v660_v31  ;;  %v703_v24 = vadd.f32 %v699_v12, %v660_v31 }
  0xa9   : > { %v664_v36 = vpop.xlane.xlu1 %663 }
  0xaa   : > { %v662_v44 = vpop.xlane.xlu0 %661  ;;  %v3297_v2 = vadd.f32 %v695_v10, %v664_v36  ;;  %v3300_v5 = vadd.f32 %v699_v12, %v664_v36 }
  0xab   : > { %v3302_v47 = vadd.f32 %v695_v10, %v662_v44  ;;  %v3304_v61 = vadd.f32 %v699_v12, %v662_v44 }
  0xad   : > { %v3223_v55 = vpop.xlane.xlu1 %665 }
  0xae   : > { %v668_v8 = vpop.xlane.xlu0 %667  ;;  %v3310_v7 = vadd.f32 %v695_v10, %v3223_v55 }
  0xaf   : > { %v3315_v31 = vadd.f32 %v695_v10, %v668_v8 }
  0xb1   : > { %v3230_v9 = vpop.xlane.xlu1 %669 }
  0xb2   : > { %v672_v13 = vpop.xlane.xlu0 %671  ;;  %v3322_v44 = vadd.f32 %v695_v10, %v3230_v9 }
  0xb3   : > { %v3232_v14 = vadd.f32 %v695_v10, %v672_v13  ;;  %v3234_v15 = vadd.f32 %v699_v12, %v672_v13  ;;  %v3313_v13 = vadd.f32 %v699_v12, %v3223_v55  ;;  %v418_v55 = vadd.s32 40, %v3221_v39 }
  0xb5   : > { %5402 = vst [vmem:[#allocation3_spill] sm:$0xff] %v3232_v14  ;;  %5403 = vst [vmem:[#allocation4_spill] sm:$0xff] %v3234_v15  ;;  %v674_v17 = vpop.xlane.xlu1 %673 }
  0xb6   : > { %v3236_v18 = vadd.f32 %v695_v10, %v674_v17  ;;  %v3238_v20 = vadd.f32 %v699_v12, %v674_v17  ;;  %v676_v21 = vpop.xlane.xlu0 %675  ;;  %v3317_v17 = vadd.f32 %v699_v12, %v668_v8 }
  0xb7   : > { %v3240_v22 = vadd.f32 %v695_v10, %v676_v21  ;;  %v3242_v23 = vadd.f32 %v699_v12, %v676_v21  ;;  %v3325_v21 = vadd.f32 %v699_v12, %v3230_v9 }
  0xb8   : > { %5404 = vst [vmem:[#allocation5_spill] sm:$0xff] %v3236_v18  ;;  %5405 = vst [vmem:[#allocation6_spill] sm:$0xff] %v3238_v20  ;;  %v3490_v20 = vadd.s32 88, %v3221_v39 }
  0xb9   : > { %5406 = vst [vmem:[#allocation7_spill] sm:$0xff] %v3240_v22  ;;  %5407 = vst [vmem:[#allocation8_spill] sm:$0xff] %v3242_v23  ;;  %v678_v25 = vpop.xlane.xlu1 %677 }
  0xba   : > { %v3244_v26 = vadd.f32 %v695_v10, %v678_v25  ;;  %v3246_v27 = vadd.f32 %v699_v12, %v678_v25  ;;  %v680_v28 = vpop.xlane.xlu0 %679  ;;  %5424 = vst [vmem:[#allocation25_spill] sm:$0xff] %v3325_v21  ;;  %v3328_v25 = vadd.s32 %v3273_v4, %v416_v62  ;;  %5453 = vst [vmem:[#allocation43_spill] sm:$0xff] %v3490_v20 }
  0xbb   : > { %v3248_v29 = vadd.f32 %v695_v10, %v680_v28  ;;  %v3250_v30 = vadd.f32 %v699_v12, %v680_v28 }
  0xbc   : > { %5408 = vst [vmem:[#allocation9_spill] sm:$0xff] %v3244_v26  ;;  %5409 = vst [vmem:[#allocation10_spill] sm:$0xff] %v3246_v27 }
  0xbd   : > { %5410 = vst [vmem:[#allocation11_spill] sm:$0xff] %v3248_v29  ;;  %5411 = vst [vmem:[#allocation12_spill] sm:$0xff] %v3250_v30  ;;  %v682_v32 = vpop.xlane.xlu1 %681 }
  0xbe   : > { %v3252_v46 = vadd.f32 %v695_v10, %v682_v32  ;;  %v3254_v33 = vadd.f32 %v699_v12, %v682_v32  ;;  %v684_v34 = vpop.xlane.xlu0 %683  ;;  %v3335_v32 = vadd.s32 %v3273_v4, %v417_v3  ;;  %v3367_v3 = vadd.s32 %v3273_v4, %v418_v55 }
  0xbf   : > { %v3256_v53 = vadd.f32 %v695_v10, %v684_v34  ;;  %v3258_v35 = vadd.f32 %v699_v12, %v684_v34  ;;  %v420_v34 = vadd.s32 56, %v3221_v39 }
  0xc0   : > { %5412 = vst [vmem:[#allocation13_spill] sm:$0xff] %v3252_v46  ;;  %5413 = vst [vmem:[#allocation14_spill] sm:$0xff] %v3254_v33 }
  0xc1   : > { %5414 = vst [vmem:[#allocation15_spill] sm:$0xff] %v3256_v53  ;;  %5415 = vst [vmem:[#allocation16_spill] sm:$0xff] %v3258_v35  ;;  %v686_v37 = vpop.xlane.xlu1 %685 }
  0xc2   : > { %v3260_v54 = vadd.f32 %v695_v10, %v686_v37  ;;  %v3262_v38 = vadd.f32 %v699_v12, %v686_v37  ;;  %v688_v40 = vpop.xlane.xlu0 %687 }
  0xc3   : > { %v3264_v60 = vadd.f32 %v695_v10, %v688_v40  ;;  %v3266_v41 = vadd.f32 %v699_v12, %v688_v40 }
  0xc4   : > { %5416 = vst [vmem:[#allocation17_spill] sm:$0xff] %v3260_v54  ;;  %5417 = vst [vmem:[#allocation18_spill] sm:$0xff] %v3262_v38 }
  0xc5   : > { %5418 = vst [vmem:[#allocation19_spill] sm:$0xff] %v3264_v60  ;;  %5419 = vst [vmem:[#allocation20_spill] sm:$0xff] %v3266_v41  ;;  %v690_v42 = vpop.xlane.xlu1 %689 }
  0xc6   : > { %v3268_v63 = vadd.f32 %v695_v10, %v690_v42  ;;  %v3270_v43 = vadd.f32 %v699_v12, %v690_v42  ;;  %v1361_v45 = vpop.xlane.xlu0 %1360  ;;  %v419_v10 = vadd.s32 48, %v3221_v39 }
  0xc7   : > { %v1403_v8 = vadd.f32 %v3286_v56, %v1361_v45  ;;  %v1404_v9 = vadd.f32 %v3291_v59, %v1361_v45 }
  0xc8   : > { %5420 = vst [vmem:[#allocation21_spill] sm:$0xff] %v3268_v63  ;;  %5421 = vst [vmem:[#allocation22_spill] sm:$0xff] %v3270_v43  ;;  %v421_v43 = vadd.s32 64, %v3221_v39  ;;  %v3377_v54 = vadd.s32 %v3273_v4, %v419_v10 }
  0xc9   : > { %v1363_v48 = vpop.xlane.xlu1 %1362 }
  0xca   : > { %v1365_v51 = vpop.xlane.xlu0 %1364  ;;  %v3341_v12 = vadd.f32 %v3286_v56, %v1363_v48  ;;  %v3344_v37 = vadd.f32 %v3291_v59, %v1363_v48  ;;  %5427 = vst [vmem:[#allocation28_spill] sm:$0xff] %v3377_v54 }
  0xcb   : > { %v3347_v40 = vadd.f32 %v3286_v56, %v1365_v51  ;;  %v3352_v42 = vadd.f32 %v3291_v59, %v1365_v51 }
  0xcd   : > { %v1367_v57 = vpop.xlane.xlu1 %1366 }
  0xce   : > { %v1369_v0 = vpop.xlane.xlu0 %1368  ;;  %v3355_v50 = vadd.f32 %v3286_v56, %v1367_v57  ;;  %v3358_v45 = vadd.f32 %v3291_v59, %v1367_v57 }
  0xcf   : > { %v3361_v11 = vadd.f32 %v3286_v56, %v1369_v0  ;;  %v3364_v62 = vadd.f32 %v3291_v59, %v1369_v0  ;;  %v3380_v0 = vadd.s32 %v3273_v4, %v420_v34 }
  0xd1   : > { %v1371_v36 = vpop.xlane.xlu1 %1370  ;;  %5428 = vst [vmem:[#allocation29_spill] sm:$0xff] %v3380_v0 }
  0xd2   : > { %v1373_v28 = vpop.xlane.xlu0 %1372  ;;  %v3370_v51 = vadd.f32 %v3286_v56, %v1371_v36  ;;  %v3374_v38 = vadd.f32 %v3291_v59, %v1371_v36 }
  0xd3   : > { %v3383_v33 = vadd.f32 %v3286_v56, %v1373_v28  ;;  %v3386_v46 = vadd.f32 %v3291_v59, %v1373_v28 }
  0xd4   : > { %5425 = vst [vmem:[#allocation26_spill] sm:$0xff] %v3370_v51  ;;  %5426 = vst [vmem:[#allocation27_spill] sm:$0xff] %v3374_v38 }
  0xd5   : > { %5429 = vst [vmem:[#allocation30_spill] sm:$0xff] %v3383_v33  ;;  %5430 = vst [vmem:[#allocation31_spill] sm:$0xff] %v3386_v46 }
  0xd6   : > { %v1377_v63 = vpop.xlane.xlu0 %1376 }
  0xda   : > { %v1381_v26 = vpop.xlane.xlu0 %1380 }
  0xfd   : > { %v1375_v48 = vpop.xlane.xlu1 %1374 }
  0xfe   : > { %v3389_v36 = vadd.f32 %v3286_v56, %v1375_v48  ;;  %v3392_v10 = vadd.f32 %v3291_v59, %v1375_v48 }
 0x100   : > { %5431 = vst [vmem:[#allocation32_spill] sm:$0xff] %v3389_v36  ;;  %5432 = vst [vmem:[#allocation33_spill] sm:$0xff] %v3392_v10 }
 0x101   : > { %v1379_v28 = vpop.xlane.xlu1 %1378 }
 0x102   : > { %v3436_v22 = vadd.f32 %v3286_v56, %v1379_v28 }
 0x104   : > { %5442 = vst [vmem:[#allocation37_spill] sm:$0xff] %v3436_v22  ;;  %v3483_v22 = vadd.f32 %v3286_v56, %v1381_v26 }
 0x106   : > { %5451 = vst [vmem:[#allocation41_spill] sm:$0xff] %v3483_v22 }
 0x124   : > { %v548_v52 = vpop.f32.mrb[0].mxu0 }
 0x125   : > { %v734_v41 = vmul.f32 2.0, %v548_v52  ;;  %v1249_v57 = vpop.f32.mrb[0].mxu1  ;;  %v550_v60 = vpop.f32.mrb[1].mxu0 }
 0x126   : > { %v1435_v55 = vmul.f32 2.0, %v1249_v57  ;;  %v1251_v35 = vpop.f32.mrb[1].mxu1  ;;  %v735_v53 = vmul.f32 2.0, %v550_v60  ;;  %v3395_v57 = vadd.s32 %v3273_v4, %v421_v43  ;;  %v3398_v60 = vadd.f32 %v3286_v56, %v1377_v63 }
 0x127   : > { %v766_v52 = vsub.f32 %v702_v1, %v734_v41  ;;  %v1436_v30 = vmul.f32 2.0, %v1251_v35 }
 0x128   : > { %v1467_v29 = vsub.f32 %v1403_v8, %v1435_v55  ;;  %v767_v34 = vsub.f32 %v703_v24, %v735_v53  ;;  %v554_v27 = vpop.f32.mrb[2].mxu0  ;;  %5433 = vst [vmem:[#allocation34_spill] sm:$0xff] %v3395_v57  ;;  %5434 = vst [vmem:[#allocation35_spill] sm:$0xff] %v3398_v60  ;;  %v422_v8 = vadd.s32 72, %v3221_v39  ;;  %v3487_v57 = vadd.f32 %v3291_v59, %v1381_v26 }
 0x129   : > { %vm798_vm3 = vcmp.gt.f32.partialorder %v766_v52, 0.0  ;;  %v1468_v41 = vsub.f32 %v1404_v9, %v1436_v30  ;;  %v736_v35 = vmul.f32 2.0, %v554_v27  ;;  %v1255_v1 = vpop.f32.mrb[2].mxu1  ;;  %v556_v48 = vpop.f32.mrb[3].mxu0  ;;  %v423_v27 = vadd.s32 80, %v3221_v39 }
 0x12a   : > { %vm3406_vm5 = vmand %vm449_vm0, %vm798_vm3  ;;  %vm1499_vm6 = vcmp.gt.f32.partialorder %v1467_v29, 0.0  ;;  %vm799_vm7 = vcmp.gt.f32.partialorder %v767_v34, 0.0  ;;  %v1437_v43 = vmul.f32 2.0, %v1255_v1  ;;  %v1257_v24 = vpop.f32.mrb[3].mxu1  ;;  %v3425_v1 = vadd.f32 %v3291_v59, %v1377_v63  ;;  %5452 = vst [vmem:[#allocation42_spill] sm:$0xff] %v3487_v57 }
 0x12b   : > { %v3414_v30 = vsel %vm3406_vm5, %v766_v52, 1.0  ;;  %vm1500_vm8 = vcmp.gt.f32.partialorder %v1468_v41, 0.0  ;;  %vm3419_vm9 = vmand %vm449_vm0, %vm1499_vm6  ;;  %v768_v55 = vsub.f32 %v3302_v47, %v736_v35  ;;  %v1438_v23 = vmul.f32 2.0, %v1257_v24 }
 0x12c   : > { %5439 = vst [vmem:[#allocation36_spill] sm:$0xff] %v3425_v1  ;;  %2568 = vrsqrt.f32 %v3414_v30  ;;  %vm3431_vm10 = vmand %vm450_vm1, %vm1500_vm8  ;;  %v560_v60 = vpop.f32.mrb[4].mxu0  ;;  %v3439_v47 = vadd.f32 %v3291_v59, %v1379_v28  ;;  %v3443_v63 = vsel %vm3419_vm9, %v1467_v29, 1.0  ;;  %v1469_v28 = vsub.f32 %v3341_v12, %v1437_v43 }
 0x12d   : > { %v3447_v35 = vsel %vm3431_vm10, %v1468_v41, 1.0  ;;  %vm3453_vm11 = vmand %vm450_vm1, %vm799_vm7  ;;  %vm800_vm12 = vcmp.gt.f32.partialorder %v768_v55, 0.0  ;;  %v1261_v29 = vpop.f32.mrb[4].mxu1  ;;  %2570 = vrsqrt.f32 %v3443_v63  ;;  %v3477_v41 = vadd.s32 %v3273_v4, %v422_v8 }
 0x12e   : > { %5443 = vst [vmem:[#allocation38_spill] sm:$0xff] %v3439_v47  ;;  %v3460_v47 = vpop.f32.mrb[5].mxu0  ;;  %vm3472_vm14 = vmand %vm451_vm2, %vm800_vm12  ;;  %v1263_v12 = vpop.f32.mrb[5].mxu1  ;;  %v3480_v43 = vadd.s32 %v3273_v4, %v423_v27  ;;  %2572 = vrsqrt.f32 %v3447_v35  ;;  %v737_v1 = vmul.f32 2.0, %v556_v48  ;;  %v3494_v8 = vsel %vm3453_vm11, %v767_v34, 1.0 }
 0x12f   : > { %5449 = vst [vmem:[#allocation39_spill] sm:$0xff] %v3477_v41  ;;  %v3498_v27 = vsel %vm3472_vm14, %v768_v55, 1.0  ;;  %v1470_v22 = vsub.f32 %v3344_v37, %v1438_v23  ;;  %vm1501_vm15 = vcmp.gt.f32.partialorder %v1469_v28, 0.0  ;;  %vm896_vm0 = vcmp.eq.f32.partialorder %v3414_v30, inf }
 0x130   : > { %5450 = vst [vmem:[#allocation40_spill] sm:$0xff] %v3480_v43  ;;  %v3501_v43 = vpop.f32.mrb[6].mxu0  ;;  %v899_v26 = vand.u32 2147483648, %v3414_v30  ;;  %2574 = vrsqrt.f32 %v3494_v8  ;;  %vm3510_vm3 = vmand %vm451_vm2, %vm1501_vm15  ;;  %v769_v57 = vsub.f32 %v3304_v61, %v737_v1  ;;  %v738_v41 = vmul.f32 2.0, %v560_v60 }
 0x131   : > { %v3514_v48 = vpop.f32.mrb[6].mxu1  ;;  %v3516_v23 = vpop.f32.mrb[7].mxu0  ;;  %2576 = vrsqrt.f32 %v3498_v27  ;;  %vm1502_vm2 = vcmp.gt.f32.partialorder %v1470_v22, 0.0  ;;  %v3532_v39 = vsel %vm3510_vm3, %v1469_v28, 1.0  ;;  %v1607_v10 = vand.u32 2147483648, %v3447_v35 }
 0x132   : > { %v3528_v55 = vpop.f32.mrb[7].mxu1  ;;  %vm3541_vm15 = vmand %vm452_vm4, %vm1502_vm2  ;;  %2578 = vrsqrt.f32 %v3532_v39  ;;  %vm801_vm12 = vcmp.gt.f32.partialorder %v769_v57, 0.0  ;;  %v770_v1 = vsub.f32 %v3297_v2, %v738_v41  ;;  %v1439_v28 = vmul.f32 2.0, %v1261_v29 }
 0x133   : > { %v3553_v60 = vsel %vm3541_vm15, %v1470_v22, 1.0  ;;  %v906_v46 = vand.u32 2147483648, %v3494_v8  ;;  %vm3569_vm8 = vmand %vm452_vm4, %vm801_vm12  ;;  %vm912_vm2 = vcmp.eq.f32.partialorder %v3498_v27, 0.0  ;;  %vm1611_vm7 = vcmp.eq.f32.partialorder %v3532_v39, inf }
 0x134   : > { %v3548_v61 = vpop.f32.mrb[8].mxu0  ;;  %2580 = vrsqrt.f32 %v3553_v60  ;;  %v3580_v41 = vsel %vm3569_vm8, %v769_v57, 1.0  ;;  %vm802_vm6 = vcmp.gt.f32.partialorder %v770_v1, 0.0  ;;  %vm1613_vm1 = vcmp.eq.f32.partialorder %v3532_v39, 0.0 }
 0x135   : > { %v3556_v36 = vpop.f32.mrb[8].mxu1  ;;  %v3558_v18 = vpop.f32.mrb[9].mxu0  ;;  %2582 = vrsqrt.f32 %v3580_v41  ;;  %vm3588_vm4 = vmand %vm453_vm13, %vm802_vm6  ;;  %v1440_v33 = vmul.f32 2.0, %v1263_v12  ;;  %v1471_v12 = vsub.f32 %v3347_v40, %v1439_v28  ;;  %vm5463_vm6 = vcmp.eq.f32.partialorder %v3414_v30, 0.0 }
 0x136   : > { %v2569_v15 = vpop.eup %2568  ;;  %v3573_v2 = vpop.f32.mrb[9].mxu1  ;;  %v3607_v14 = vsel %vm3588_vm4, %v770_v1, 1.0  ;;  %vm5464_vm12 = vcmp.eq.f32.partialorder %v3443_v63, inf  ;;  %v5465_v53 = vand.u32 2147483648, %v3443_v63  ;;  %v739_v9 = vmul.f32 2.0, %v3460_v47 }
 0x137   : > { %v895_v29 = vmul.f32 %v2569_v15, %v3414_v30  ;;  %v2571_v0 = vpop.eup %2570  ;;  %2584 = vrsqrt.f32 %v3607_v14  ;;  %v1441_v37 = vmul.f32 2.0, %v3514_v48 }
 0x138   : > { %v3592_v4 = vpop.f32.mrb[10].mxu0  ;;  %v2573_v57 = vpop.eup %2572  ;;  %v1596_v20 = vmul.f32 %v2571_v0, %v3443_v63 }
 0x139   : > { %v897_v19 = vsel %vm896_vm0, %v3414_v30, %v895_v29  ;;  %v3610_v21 = vpop.f32.mrb[10].mxu1  ;;  %v3612_v38 = vpop.f32.mrb[11].mxu0  ;;  %v1603_v51 = vmul.f32 %v2573_v57, %v3447_v35  ;;  %v1621_v30 = vand.u32 2147483648, %v3553_v60  ;;  %vm5467_vm0 = vcmp.eq.f32.partialorder %v3447_v35, inf }
 0x13a   : > { %5462 = vst [vmem:[#allocation44_spill] sm:$0xff] %v3612_v38  ;;  %v900_v54 = vsel %vm5463_vm6, %v899_v26, %v897_v19  ;;  %v3619_v0 = vpop.f32.mrb[11].mxu1  ;;  %v2575_v1 = vpop.eup %2574  ;;  %v1598_v40 = vsel %vm5464_vm12, %v3443_v63, %v1596_v20  ;;  %vm1620_vm6 = vcmp.eq.f32.partialorder %v3553_v60, 0.0  ;;  %v1472_v20 = vsub.f32 %v3352_v42, %v1440_v33 }
 0x13b   : > { %v1118_v29 = vsel %vm3406_vm5, %v900_v54, 0.0  ;;  %v2577_v26 = vpop.eup %2576  ;;  %vm5466_vm5 = vcmp.eq.f32.partialorder %v3443_v63, 0.0  ;;  %v1605_v28 = vsel %vm5467_vm0, %v3447_v35, %v1603_v51  ;;  %v902_v19 = vmul.f32 %v2575_v1, %v3494_v8 }
 0x13c   : > { %1150 = vst [vmem:[%s3599_s19] sm:$0xff] %v1118_v29  ;;  %v1601_v54 = vsel %vm5466_vm5, %v5465_v53, %v1598_v40  ;;  %v3645_v57 = vpop.f32.mrb[12].mxu0  ;;  %vm5468_vm12 = vcmp.eq.f32.partialorder %v3447_v35, 0.0  ;;  %v909_v63 = vmul.f32 %v2577_v26, %v3498_v27  ;;  %vm1503_vm5 = vcmp.gt.f32.partialorder %v1471_v12, 0.0  ;;  %v2579_v51 = vpop.eup %2578 }
 0x13d   : > { %v1608_v38 = vsel %vm5468_vm12, %v1607_v10, %v1605_v28  ;;  %v1819_v29 = vsel %vm3419_vm9, %v1601_v54, 0.0  ;;  %v3652_v40 = vpop.f32.mrb[12].mxu1  ;;  %v3654_v53 = vpop.f32.mrb[13].mxu0  ;;  %vm5469_vm0 = vcmp.eq.f32.partialorder %v3494_v8, inf  ;;  %vm1504_vm12 = vcmp.gt.f32.partialorder %v1472_v20, 0.0  ;;  %vm3665_vm9 = vmand %vm453_vm13, %vm1503_vm5 }
 0x13e   : > { %v1820_v33 = vsel %vm3431_vm10, %v1608_v38, 0.0  ;;  %1851 = vst [vmem:[%s3628_s22] sm:$0xff] %v1819_v29  ;;  %v904_v42 = vsel %vm5469_vm0, %v3494_v8, %v902_v19  ;;  %v3670_v35 = vpop.f32.mrb[13].mxu1  ;;  %vm5472_vm10 = vcmp.eq.f32.partialorder %v3494_v8, 0.0  ;;  %vm5473_vm0 = vcmp.eq.f32.partialorder %v3498_v27, inf  ;;  %v2581_v8 = vpop.eup %2580 }
 0x13f   : > { %1852 = vst [vmem:[%s3628_s22 + $0x8] sm:$0xff] %v1820_v33  ;;  %v907_v38 = vsel %vm5472_vm10, %v906_v46, %v904_v42  ;;  %v911_v52 = vsel %vm5473_vm0, %v3498_v27, %v909_v63  ;;  %v1610_v1 = vmul.f32 %v2579_v51, %v3532_v39  ;;  %vm5474_vm13 = vcmp.ne.s32.totalorder %v3307_v6, %v3289_v58  ;;  %v2583_v51 = vpop.eup %2582 }
 0x140   : > { %vm3682_vm5 = vmand %vm5474_vm13, %vm1504_vm12  ;;  %v3688_v47 = vsel %vm3665_vm9, %v1471_v12, 1.0  ;;  %v1119_v46 = vsel %vm3453_vm11, %v907_v38, 0.0  ;;  %v5477_v54 = vand.u32 2147483648, %v3498_v27  ;;  %vm455_vm12 = vcmp.ne.s32.totalorder %v3328_v25, %v3275_v49  ;;  %v3703_v12 = vpop.f32.mrb[14].mxu0 }
 0x141   : > { %v3698_v19 = vsel %vm3682_vm5, %v1472_v20, 1.0  ;;  %2586 = vrsqrt.f32 %v3688_v47  ;;  %1151 = vst [vmem:[%s3599_s19 + $0x8] sm:$0xff] %v1119_v46  ;;  %v1612_v27 = vsel %vm1611_vm7, %v3532_v39, %v1610_v1  ;;  %v1617_v29 = vmul.f32 %v2581_v8, %v3553_v60  ;;  %v3713_v20 = vpop.f32.mrb[14].mxu1  ;;  %v3715_v63 = vpop.f32.mrb[15].mxu0 }
 0x142   : > { %v914_v28 = vsel %vm912_vm2, %v5477_v54, %v911_v52  ;;  %vm917_vm11 = vcmp.eq.f32.partialorder %v3580_v41, inf  ;;  %v5478_v33 = vand.u32 2147483648, %v3532_v39  ;;  %v920_v42 = vand.u32 2147483648, %v3580_v41  ;;  %v3727_v38 = vpop.f32.mrb[15].mxu1  ;;  %v2585_v8 = vpop.eup %2584 }
 0x143   : > { %v1120_v24 = vsel %vm3472_vm14, %v914_v28, 0.0  ;;  %vm919_vm14 = vcmp.eq.f32.partialorder %v3580_v41, 0.0  ;;  %2588 = vrsqrt.f32 %v3698_v19  ;;  %vm456_vm7 = vcmp.ne.s32.totalorder %v3328_v25, %v3289_v58 }
 0x144   : > { %1152 = vst [vmem:[%s3599_s19 + $0x10] sm:$0xff] %v1120_v24  ;;  %v1615_v16 = vsel %vm1613_vm1, %v5478_v33, %v1612_v27  ;;  %vm5479_vm2 = vcmp.eq.f32.partialorder %v3553_v60, inf  ;;  %v916_v39 = vmul.f32 %v2583_v51, %v3580_v41  ;;  %vm924_vm1 = vcmp.eq.f32.partialorder %v3607_v14, inf  ;;  %v3742_v24 = vpop.f32.mrb[16].mxu0 }
 0x145   : > { %v1619_v52 = vsel %vm5479_vm2, %v3553_v60, %v1617_v29  ;;  %v1821_v1 = vsel %vm3510_vm3, %v1615_v16, 0.0  ;;  %vm926_vm10 = vcmp.eq.f32.partialorder %v3607_v14, 0.0  ;;  %v927_v54 = vand.u32 2147483648, %v3607_v14  ;;  %v3751_v29 = vpop.f32.mrb[16].mxu1  ;;  %v3753_v51 = vpop.f32.mrb[17].mxu0 }
 0x146   : > { %v1622_v46 = vsel %vm1620_vm6, %v1621_v30, %v1619_v52  ;;  %1853 = vst [vmem:[%s3628_s22 + $0x10] sm:$0xff] %v1821_v1  ;;  %v771_v28 = vsub.f32 %v3300_v5, %v739_v9  ;;  %v918_v27 = vsel %vm917_vm11, %v3580_v41, %v916_v39  ;;  %v923_v60 = vmul.f32 %v2585_v8, %v3607_v14  ;;  %v3760_v33 = vpop.f32.mrb[17].mxu1 }
 0x147   : > { %v1822_v34 = vsel %vm3541_vm15, %v1622_v46, 0.0  ;;  %v740_v30 = vmul.f32 2.0, %v3501_v43  ;;  %v921_v5 = vsel %vm919_vm14, %v920_v42, %v918_v27  ;;  %v1442_v9 = vmul.f32 2.0, %v3528_v55  ;;  %vm5480_vm15 = vmmov %vm5474_vm13 }
 0x148   : > { %1854 = vst [vmem:[%s3628_s22 + $0x18] sm:$0xff] %v1822_v34  ;;  %vm803_vm3 = vcmp.gt.f32.partialorder %v771_v28, 0.0  ;;  %v1121_v16 = vsel %vm3569_vm8, %v921_v5, 0.0  ;;  %v925_v43 = vsel %vm924_vm1, %v3607_v14, %v923_v60  ;;  %v741_v55 = vmul.f32 2.0, %v3516_v23  ;;  %v3785_v1 = vpop.f32.mrb[18].mxu0 }
 0x149   : > { %vm3770_vm6 = vmand %vm5480_vm15, %vm803_vm3  ;;  %v772_v48 = vsub.f32 %v3310_v7, %v740_v30  ;;  %1153 = vst [vmem:[%s3599_s19 + $0x18] sm:$0xff] %v1121_v16  ;;  %v928_v22 = vsel %vm926_vm10, %v927_v54, %v925_v43  ;;  %v1473_v52 = vsub.f32 %v3355_v50, %v1441_v37  ;;  %v1474_v6 = vsub.f32 %v3358_v45, %v1442_v9  ;;  %v3792_v14 = vpop.f32.mrb[18].mxu1  ;;  %v3794_v7 = vpop.f32.mrb[19].mxu0 }
 0x14a   : > { %v3781_v42 = vsel %vm3770_vm6, %v771_v28, 1.0  ;;  %v1122_v39 = vsel %vm3588_vm4, %v928_v22, 0.0  ;;  %vm1625_vm8 = vcmp.eq.f32.partialorder %v3688_v47, inf  ;;  %vm1627_vm0 = vcmp.eq.f32.partialorder %v3688_v47, 0.0  ;;  %v3800_v45 = vpop.f32.mrb[19].mxu1  ;;  %v1383_v37 = vpop.xlane.xlu1 %1382 }
 0x14b   : > { %2590 = vrsqrt.f32 %v3781_v42  ;;  %v2587_v23 = vpop.eup %2586  ;;  %1154 = vst [vmem:[%s3599_s19 + $0x20] sm:$0xff] %v1122_v39  ;;  %v1628_v50 = vand.u32 2147483648, %v3688_v47  ;;  %vm804_vm13 = vcmp.gt.f32.partialorder %v772_v48, 0.0  ;;  %vm1505_vm11 = vcmp.gt.f32.partialorder %v1473_v52, 0.0 }
 0x14c   : > { %vm1506_vm14 = vcmp.gt.f32.partialorder %v1474_v6, 0.0  ;;  %vm457_vm4 = vcmp.ne.s32.totalorder %v3335_v32, %v3275_v49  ;;  %v1624_v15 = vmul.f32 %v2587_v23, %v3688_v47  ;;  %vm1632_vm2 = vcmp.eq.f32.partialorder %v3698_v19, inf  ;;  %vm3809_vm10 = vmand %vm455_vm12, %vm804_vm13  ;;  %v3829_v5 = vpop.f32.mrb[20].mxu0 }
 0x14d   : > { %vm1634_vm1 = vcmp.eq.f32.partialorder %v3698_v19, 0.0  ;;  %v1635_v8 = vand.u32 2147483648, %v3698_v19  ;;  %v2589_v54 = vpop.eup %2588  ;;  %v3815_v28 = vsel %vm3809_vm10, %v772_v48, 1.0  ;;  %vm3820_vm3 = vmand %vm455_vm12, %vm1505_vm11  ;;  %v773_v27 = vsub.f32 %v3313_v13, %v741_v55  ;;  %v3847_v43 = vpop.f32.mrb[21].mxu0 }
 0x14e   : > { %v742_v60 = vmul.f32 2.0, %v3548_v61  ;;  %v1443_v30 = vmul.f32 2.0, %v3556_v36  ;;  %vm458_vm15 = vcmp.ne.s32.totalorder %v3335_v32, %v3289_v58  ;;  %v1626_v9 = vsel %vm1625_vm8, %v3688_v47, %v1624_v15  ;;  %vm3840_vm12 = vmand %vm456_vm7, %vm1506_vm14  ;;  %v3845_v61 = vpop.f32.mrb[20].mxu1 }
 0x14f   : > { %v1631_v16 = vmul.f32 %v2589_v54, %v3698_v19  ;;  %2592 = vrsqrt.f32 %v3815_v28  ;;  %v1444_v36 = vmul.f32 2.0, %v3573_v2  ;;  %v1629_v48 = vsel %vm1627_vm0, %v1628_v50, %v1626_v9  ;;  %v3857_v23 = vpop.f32.mrb[21].mxu1 }
 0x150   : > { %v3853_v55 = vsel %vm3820_vm3, %v1473_v52, 1.0  ;;  %v743_v22 = vmul.f32 2.0, %v3558_v18  ;;  %v744_v39 = vmul.f32 2.0, %v3592_v4  ;;  %v1823_v15 = vsel %vm3665_vm9, %v1629_v48, 0.0  ;;  %v3873_v4 = vpop.f32.mrb[22].mxu0 }
 0x151   : > { %v1633_v2 = vsel %vm1632_vm2, %v3698_v19, %v1631_v16  ;;  %v3866_v47 = vsel %vm3840_vm12, %v1474_v6, 1.0  ;;  %2594 = vrsqrt.f32 %v3853_v55  ;;  %1855 = vst [vmem:[%s3628_s22 + $0x20] sm:$0xff] %v1823_v15  ;;  %vm931_vm8 = vcmp.eq.f32.partialorder %v3781_v42, inf  ;;  %v3886_v19 = vpop.f32.mrb[22].mxu1 }
 0x152   : > { %v1636_v18 = vsel %vm1634_vm1, %v1635_v8, %v1633_v2  ;;  %v3876_v52 = vadd.f32 %v3286_v56, %v1383_v37  ;;  %v3879_v10 = vadd.f32 %v3291_v59, %v1383_v37  ;;  %vm933_vm9 = vcmp.eq.f32.partialorder %v3781_v42, 0.0  ;;  %v3888_v8 = vpop.f32.mrb[23].mxu0  ;;  %v3894_v26 = vpop.f32.mrb[23].mxu1 }
 0x153   : > { %v1824_v6 = vsel %vm3682_vm5, %v1636_v18, 0.0  ;;  %v934_v50 = vand.u32 2147483648, %v3781_v42  ;;  %2596 = vrsqrt.f32 %v3866_v47  ;;  %vm938_vm0 = vcmp.eq.f32.partialorder %v3815_v28, inf }
 0x154   : > { %1856 = vst [vmem:[%s3628_s22 + $0x28] sm:$0xff] %v1824_v6  ;;  %vm805_vm13 = vcmp.gt.f32.partialorder %v773_v27, 0.0  ;;  %v774_v54 = vsub.f32 %v3315_v31, %v742_v60  ;;  %v1475_v37 = vsub.f32 %v3361_v11, %v1443_v30  ;;  %v1476_v48 = vsub.f32 %v3364_v62, %v1444_v36  ;;  %v3916_v25 = vpop.f32.mrb[24].mxu0 }
 0x155   : > { %v2591_v9 = vpop.eup %2590  ;;  %vm3900_vm11 = vmand %vm456_vm7, %vm805_vm13  ;;  %v775_v2 = vsub.f32 %v3317_v17, %v743_v22  ;;  %v3907_v31 = vsub.f32 %v3322_v44, %v744_v39  ;;  %v941_v62 = vand.u32 2147483648, %v3815_v28  ;;  %vm1639_vm1 = vcmp.eq.f32.partialorder %v3853_v55, inf  ;;  %v3929_v44 = vpop.f32.mrb[24].mxu1 }
 0x156   : > { %v930_v11 = vmul.f32 %v2591_v9, %v3781_v42  ;;  %v3912_v60 = vsel %vm3900_vm11, %v773_v27, 1.0  ;;  %vm806_vm14 = vcmp.gt.f32.partialorder %v774_v54, 0.0  ;;  %vm1507_vm2 = vcmp.gt.f32.partialorder %v1475_v37, 0.0  ;;  %v3931_v27 = vpop.f32.mrb[25].mxu0  ;;  %v3947_v39 = vpop.f32.mrb[25].mxu1 }
 0x157   : > { %2598 = vrsqrt.f32 %v3912_v60  ;;  %vm3925_vm5 = vmand %vm457_vm4, %vm806_vm14  ;;  %5493 = vst [vmem:[#allocation45_spill] sm:$0xff] %v3931_v27  ;;  %vm1508_vm7 = vcmp.gt.f32.partialorder %v1476_v48, 0.0  ;;  %vm807_vm13 = vcmp.gt.f32.partialorder %v775_v2, 0.0  ;;  %v1642_v6 = vand.u32 2147483648, %v3853_v55 }
 0x158   : > { %v932_v30 = vsel %vm931_vm8, %v3781_v42, %v930_v11  ;;  %v3938_v36 = vsel %vm3925_vm5, %v774_v54, 1.0  ;;  %vm3943_vm14 = vmand %vm457_vm4, %vm1507_vm2  ;;  %vm1646_vm8 = vcmp.eq.f32.partialorder %v3866_v47, inf  ;;  %v1649_v27 = vand.u32 2147483648, %v3866_v47 }
 0x159   : > { %v2593_v15 = vpop.eup %2592  ;;  %v935_v18 = vsel %vm933_vm9, %v934_v50, %v932_v30  ;;  %2600 = vrsqrt.f32 %v3938_v36  ;;  %vm3957_vm4 = vmand %vm458_vm15, %vm1508_vm7  ;;  %vm1648_vm9 = vcmp.eq.f32.partialorder %v3866_v47, 0.0  ;;  %v3967_v42 = vsel %vm3943_vm14, %v1475_v37, 1.0  ;;  %v3969_v50 = vpop.f32.mrb[26].mxu0 }
 0x15a   : > { %v1123_v9 = vsel %vm3770_vm6, %v935_v18, 0.0  ;;  %v937_v11 = vmul.f32 %v2593_v15, %v3815_v28  ;;  %5498 = vst [vmem:[#allocation46_spill] sm:$0xff] %v3969_v50  ;;  %v3975_v59 = vsel %vm3957_vm4, %v1476_v48, 1.0  ;;  %2602 = vrsqrt.f32 %v3967_v42  ;;  %vm3982_vm6 = vmand %vm458_vm15, %vm807_vm13  ;;  %v3987_v15 = vpop.f32.mrb[26].mxu1  ;;  %v3989_v18 = vpop.f32.mrb[27].mxu0 }
 0x15b   : > { %v2595_v30 = vpop.eup %2594  ;;  %1155 = vst [vmem:[%s3599_s19 + $0x28] sm:$0xff] %v1123_v9  ;;  %v1445_v37 = vmul.f32 2.0, %v3610_v21  ;;  %5501 = vst [vmem:[#allocation47_spill] sm:$0xff] %v3987_v15  ;;  %vm945_vm2 = vcmp.eq.f32.partialorder %v3912_v60, inf  ;;  %2604 = vrsqrt.f32 %v3975_v59  ;;  %v3999_v32 = vpop.f32.mrb[27].mxu1  ;;  %vm5504_vm7 = vcmp.eq.f32.partialorder %v3815_v28, 0.0 }
 0x15c   : > { %5502 = vst [vmem:[#allocation48_spill] sm:$0xff] %v3989_v18  ;;  %v939_v48 = vsel %vm938_vm0, %v3815_v28, %v937_v11  ;;  %v1638_v9 = vmul.f32 %v2595_v30, %v3853_v55  ;;  %5503 = vst [vmem:[#allocation49_spill] sm:$0xff] %v3999_v32  ;;  %vm947_vm13 = vcmp.eq.f32.partialorder %v3912_v60, 0.0  ;;  %v948_v11 = vand.u32 2147483648, %v3912_v60  ;;  %v5524_v32 = vld [vmem:[#allocation3_spill] sm:$0xff] }
 0x15d   : > { %v2597_v21 = vpop.eup %2596  ;;  %v942_v18 = vsel %vm5504_vm7, %v941_v62, %v939_v48  ;;  %vm952_vm0 = vcmp.eq.f32.partialorder %v3938_v36, inf  ;;  %v4015_v28 = vsel %vm3982_vm6, %v775_v2, 1.0  ;;  %v4017_v62 = vpop.f32.mrb[28].mxu0  ;;  %vm5506_vm7 = vcmp.eq.f32.partialorder %v3853_v55, 0.0 }
 0x15e   : > { %v1124_v30 = vsel %vm3809_vm10, %v942_v18, 0.0  ;;  %v1640_v15 = vsel %vm1639_vm1, %v3853_v55, %v1638_v9  ;;  %v1645_v50 = vmul.f32 %v2597_v21, %v3866_v47  ;;  %5505 = vst [vmem:[#allocation50_spill] sm:$0xff] %v4017_v62  ;;  %v955_v18 = vand.u32 2147483648, %v3938_v36  ;;  %v4025_v48 = vpop.f32.mrb[28].mxu1  ;;  %v4027_v9 = vpop.f32.mrb[29].mxu0 }
 0x15f   : > { %1156 = vst [vmem:[%s3599_s19 + $0x30] sm:$0xff] %v1124_v30  ;;  %v1643_v46 = vsel %vm5506_vm7, %v1642_v6, %v1640_v15  ;;  %2606 = vrsqrt.f32 %v4015_v28  ;;  %5507 = vst [vmem:[#allocation51_spill] sm:$0xff] %v4025_v48  ;;  %vm1655_vm1 = vcmp.eq.f32.partialorder %v3967_v42, 0.0  ;;  %vm808_vm7 = vcmp.gt.f32.partialorder %v3907_v31, 0.0  ;;  %v4036_v55 = vpop.f32.mrb[29].mxu1  ;;  %v5513_v30 = vld [vmem:[#allocation26_spill] sm:$0xff] }
 0x160   : > { %5508 = vst [vmem:[#allocation52_spill] sm:$0xff] %v4027_v9  ;;  %v1647_v2 = vsel %vm1646_vm8, %v3866_v47, %v1645_v50  ;;  %v1825_v21 = vsel %vm3820_vm3, %v1643_v46, 0.0  ;;  %5509 = vst [vmem:[#allocation53_spill] sm:$0xff] %v4036_v55  ;;  %vm5510_vm10 = vcmp.ne.s32.totalorder %v3367_v3, %v3275_v49  ;;  %v1446_v34 = vmul.f32 2.0, %v3619_v0  ;;  %v5514_v9 = vld [vmem:[#allocation44_spill] sm:$0xff]  ;;  %v4062_v0 = vpop.f32.mrb[30].mxu0 }
 0x161   : > { %v2599_v6 = vpop.eup %2598  ;;  %v1650_v15 = vsel %vm1648_vm9, %v1649_v27, %v1647_v2  ;;  %1857 = vst [vmem:[%s3628_s22 + $0x30] sm:$0xff] %v1825_v21  ;;  %vm4044_vm15 = vmand %vm5510_vm10, %vm808_vm7  ;;  %v1477_v46 = vsub.f32 %v5513_v30, %v1445_v37  ;;  %v745_v48 = vmul.f32 2.0, %v5514_v9  ;;  %v5515_v2 = vld [vmem:[#allocation28_spill] sm:$0xff]  ;;  %v746_v21 = vmul.f32 2.0, %v3645_v57  ;;  %v4069_v13 = vpop.f32.mrb[30].mxu1 }
 0x162   : > { %v1826_v55 = vsel %vm3840_vm12, %v1650_v15, 0.0  ;;  %v944_v47 = vmul.f32 %v2599_v6, %v3912_v60  ;;  %v4057_v27 = vsel %vm4044_vm15, %v3907_v31, 1.0  ;;  %vm461_vm3 = vcmp.ne.s32.totalorder %v5515_v2, %v3275_v49  ;;  %5516 = vst [vmem:[#allocation26_spill] sm:$0xff] %v4062_v0  ;;  %5517 = vst [vmem:[#allocation44_spill] sm:$0xff] %v4069_v13  ;;  %v4071_v31 = vpop.f32.mrb[31].mxu0  ;;  %v4078_v30 = vpop.f32.mrb[31].mxu1 }
 0x163   : > { %v2601_v37 = vpop.eup %2600  ;;  %1858 = vst [vmem:[%s3628_s22 + $0x38] sm:$0xff] %v1826_v55  ;;  %v1656_v9 = vand.u32 2147483648, %v3967_v42  ;;  %vm1660_vm12 = vcmp.eq.f32.partialorder %v3975_v59, inf  ;;  %vm1662_vm8 = vcmp.eq.f32.partialorder %v3975_v59, 0.0  ;;  %2608 = vrsqrt.f32 %v4057_v27  ;;  %5518 = vst [vmem:[#allocation28_spill] sm:$0xff] %v4071_v31  ;;  %v5519_v55 = vld [vmem:[#allocation27_spill] sm:$0xff] }
 0x164   : > { %v946_v57 = vsel %vm945_vm2, %v3912_v60, %v944_v47  ;;  %v951_v6 = vmul.f32 %v2601_v37, %v3938_v36  ;;  %v1478_v15 = vsub.f32 %v5519_v55, %v1446_v34  ;;  %vm1509_vm9 = vcmp.gt.f32.partialorder %v1477_v46, 0.0  ;;  %5520 = vst [vmem:[#allocation27_spill] sm:$0xff] %v4078_v30  ;;  %v2603_v0 = vpop.eup %2602  ;;  %v5523_v47 = vld [vmem:[#allocation25_spill] sm:$0xff] }
 0x165   : > { %v949_v62 = vsel %vm947_vm13, %v948_v11, %v946_v57  ;;  %v1663_v13 = vand.u32 2147483648, %v3975_v59  ;;  %vm4086_vm7 = vmand %vm5510_vm10, %vm1509_vm9  ;;  %v777_v37 = vsub.f32 %v5523_v47, %v745_v48  ;;  %v778_v34 = vsub.f32 %v5524_v32, %v746_v21  ;;  %v2605_v55 = vpop.eup %2604 }
 0x166   : > { %v1125_v30 = vsel %vm3900_vm11, %v949_v62, 0.0  ;;  %v953_v60 = vsel %vm952_vm0, %v3938_v36, %v951_v6  ;;  %v1652_v11 = vmul.f32 %v2603_v0, %v3967_v42  ;;  %vm1510_vm2 = vcmp.gt.f32.partialorder %v1478_v15, 0.0  ;;  %v5533_v6 = vld [vmem:[#allocation43_spill] sm:$0xff] }
 0x167   : > { %1157 = vst [vmem:[%s3599_s19 + $0x38] sm:$0xff] %v1125_v30  ;;  %vm5525_vm13 = vcmp.eq.f32.partialorder %v3938_v36, 0.0  ;;  %v1659_v48 = vmul.f32 %v2605_v55, %v3975_v59  ;;  %vm5526_vm9 = vcmp.ne.s32.totalorder %v3367_v3, %v3289_v58  ;;  %v4111_v32 = vsel %vm4086_vm7, %v1477_v46, 1.0 }
 0x168   : > { %v956_v57 = vsel %vm5525_vm13, %v955_v18, %v953_v60  ;;  %vm4105_vm10 = vmand %vm5526_vm9, %vm1510_vm2  ;;  %vm809_vm11 = vcmp.gt.f32.partialorder %v777_v37, 0.0  ;;  %vm5529_vm0 = vcmp.eq.f32.partialorder %v3967_v42, inf  ;;  %2610 = vrsqrt.f32 %v4111_v32 }
 0x169   : > { %v1126_v62 = vsel %vm3925_vm5, %v956_v57, 0.0  ;;  %v1654_v36 = vsel %vm5529_vm0, %v3967_v42, %v1652_v11  ;;  %v4120_v18 = vsel %vm4105_vm10, %v1478_v15, 1.0  ;;  %v2607_v21 = vpop.eup %2606  ;;  %v1661_v17 = vsel %vm1660_vm12, %v3975_v59, %v1659_v48  ;;  %vm5530_vm2 = vmmov %vm5526_vm9  ;;  %v5534_v15 = vld [vmem:[#allocation23_spill] sm:$0xff]  ;;  %v4141_v42 = vpop.f32.mrb[32].mxu0 }
 0x16a   : > { %1158 = vst [vmem:[%s3599_s19 + $0x40] sm:$0xff] %v1126_v62  ;;  %v1657_v46 = vsel %vm1655_vm1, %v1656_v9, %v1654_v36  ;;  %vm959_vm5 = vcmp.eq.f32.partialorder %v4015_v28, inf  ;;  %vm4133_vm13 = vmand %vm5530_vm2, %vm809_vm11  ;;  %v4139_v30 = vadd.s32 %v5534_v15, %v5533_v6  ;;  %v1664_v9 = vsel %vm1662_vm8, %v1663_v13, %v1661_v17  ;;  %v4151_v3 = vpop.f32.mrb[33].mxu0 }
 0x16b   : > { %v1827_v47 = vsel %vm3943_vm14, %v1657_v46, 0.0  ;;  %v958_v55 = vmul.f32 %v2607_v21, %v4015_v28  ;;  %vm961_vm1 = vcmp.eq.f32.partialorder %v4015_v28, 0.0  ;;  %vm462_vm12 = vcmp.ne.s32.totalorder %v5515_v2, %v3289_v58 }
 0x16c   : > { %v1828_v60 = vsel %vm3957_vm4, %v1664_v9, 0.0  ;;  %1859 = vst [vmem:[%s3628_s22 + $0x40] sm:$0xff] %v1827_v47  ;;  %v962_v11 = vand.u32 2147483648, %v4015_v28  ;;  %vm966_vm8 = vcmp.eq.f32.partialorder %v4057_v27, inf  ;;  %2612 = vrsqrt.f32 %v4120_v18 }
 0x16d   : > { %1860 = vst [vmem:[%s3628_s22 + $0x48] sm:$0xff] %v1828_v60  ;;  %v960_v59 = vsel %vm959_vm5, %v4015_v28, %v958_v55  ;;  %v4165_v22 = vsel %vm4133_vm13, %v777_v37, 1.0  ;;  %vm810_vm14 = vcmp.gt.f32.partialorder %v778_v34, 0.0  ;;  %v1447_v54 = vmul.f32 2.0, %v3652_v40  ;;  %v2609_v13 = vpop.eup %2608  ;;  %v4178_v37 = vpop.f32.mrb[34].mxu0  ;;  %v5538_v60 = vld [vmem:[#allocation29_spill] sm:$0xff] }
 0x16e   : > { %v963_v57 = vsel %vm961_vm1, %v962_v11, %v960_v59  ;;  %vm968_vm4 = vcmp.eq.f32.partialorder %v4057_v27, 0.0  ;;  %v969_v48 = vand.u32 2147483648, %v4057_v27  ;;  %2614 = vrsqrt.f32 %v4165_v22  ;;  %vm4174_vm9 = vmand %vm461_vm3, %vm810_vm14  ;;  %v4188_v21 = vpop.f32.mrb[35].mxu0 }
 0x16f   : > { %v1127_v40 = vsel %vm3982_vm6, %v963_v57, 0.0  ;;  %v965_v62 = vmul.f32 %v2609_v13, %v4057_v27  ;;  %vm1667_vm11 = vcmp.eq.f32.partialorder %v4111_v32, inf  ;;  %v4186_v36 = vsel %vm4174_vm9, %v778_v34, 1.0  ;;  %v5537_v34 = vld [vmem:[#allocation30_spill] sm:$0xff]  ;;  %v4208_v59 = vpop.f32.mrb[36].mxu0 }
 0x170   : > { %1159 = vst [vmem:[%s3599_s19 + $0x48] sm:$0xff] %v1127_v40  ;;  %vm1669_vm0 = vcmp.eq.f32.partialorder %v4111_v32, 0.0  ;;  %v1670_v46 = vand.u32 2147483648, %v4111_v32  ;;  %vm1674_vm5 = vcmp.eq.f32.partialorder %v4120_v18, inf  ;;  %2616 = vrsqrt.f32 %v4186_v36 }
 0x171   : > { %v967_v41 = vsel %vm966_vm8, %v4057_v27, %v965_v62  ;;  %v1448_v17 = vmul.f32 2.0, %v3670_v35  ;;  %v1479_v6 = vsub.f32 %v5537_v34, %v1447_v54  ;;  %v747_v9 = vmul.f32 2.0, %v3654_v53  ;;  %v5539_v54 = vld [vmem:[#allocation31_spill] sm:$0xff]  ;;  %v5540_v27 = vld [vmem:[#allocation4_spill] sm:$0xff]  ;;  %v5543_v62 = vld [vmem:[#allocation5_spill] sm:$0xff] }
 0x172   : > { %v970_v47 = vsel %vm968_vm4, %v969_v48, %v967_v41  ;;  %vm1676_vm6 = vcmp.eq.f32.partialorder %v4120_v18, 0.0  ;;  %v1677_v55 = vand.u32 2147483648, %v4120_v18  ;;  %vm463_vm2 = vcmp.ne.s32.totalorder %v5538_v60, %v3275_v49  ;;  %v2611_v13 = vpop.eup %2610  ;;  %v4214_v48 = vpop.f32.mrb[37].mxu0 }
 0x173   : > { %v748_v11 = vmul.f32 2.0, %v3703_v12  ;;  %v1128_v35 = vsel %vm4044_vm15, %v970_v47, 0.0  ;;  %v1480_v53 = vsub.f32 %v5539_v54, %v1448_v17  ;;  %vm1511_vm1 = vcmp.gt.f32.partialorder %v1479_v6, 0.0 }
 0x174   : > { %v779_v57 = vsub.f32 %v5540_v27, %v747_v9  ;;  %1160 = vst [vmem:[%s3599_s19 + $0x50] sm:$0xff] %v1128_v35  ;;  %v1666_v40 = vmul.f32 %v2611_v13, %v4111_v32  ;;  %vm4221_vm8 = vmand %vm461_vm3, %vm1511_vm1  ;;  %v1449_v41 = vmul.f32 2.0, %v3713_v20  ;;  %v1450_v17 = vmul.f32 2.0, %v3727_v38 }
 0x175   : > { %v780_v50 = vsub.f32 %v5543_v62, %v748_v11  ;;  %vm973_vm14 = vcmp.eq.f32.partialorder %v4165_v22, inf  ;;  %vm1512_vm4 = vcmp.gt.f32.partialorder %v1480_v53, 0.0  ;;  %v4233_v34 = vsel %vm4221_vm8, %v1479_v6, 1.0  ;;  %v4248_v6 = vpop.f32.mrb[38].mxu0 }
 0x176   : > { %vm811_vm3 = vcmp.gt.f32.partialorder %v779_v57, 0.0  ;;  %v2613_v9 = vpop.eup %2612  ;;  %v1668_v47 = vsel %vm1667_vm11, %v4111_v32, %v1666_v40  ;;  %vm975_vm1 = vcmp.eq.f32.partialorder %v4165_v22, 0.0  ;;  %v976_v20 = vand.u32 2147483648, %v4165_v22  ;;  %vm4243_vm15 = vmand %vm462_vm12, %vm1512_vm4  ;;  %5546 = vst [vmem:[#allocation25_spill] sm:$0xff] %v4248_v6  ;;  %v4265_v27 = vpop.f32.mrb[39].mxu0 }
 0x177   : > { %2618 = vrsqrt.f32 %v4233_v34  ;;  %v1671_v11 = vsel %vm1669_vm0, %v1670_v46, %v1668_v47  ;;  %v1673_v13 = vmul.f32 %v2613_v9, %v4120_v18  ;;  %vm980_vm11 = vcmp.eq.f32.partialorder %v4186_v36, inf  ;;  %vm4261_vm4 = vmand %vm462_vm12, %vm811_vm3  ;;  %5549 = vst [vmem:[#allocation3_spill] sm:$0xff] %v4265_v27  ;;  %v5550_v46 = vld [vmem:[#allocation32_spill] sm:$0xff]  ;;  %v5551_v9 = vld [vmem:[#allocation33_spill] sm:$0xff] }
 0x178   : > { %v4256_v35 = vsel %vm4243_vm15, %v1480_v53, 1.0  ;;  %v2615_v40 = vpop.eup %2614  ;;  %v1829_v32 = vsel %vm4086_vm7, %v1671_v11, 0.0  ;;  %v1481_v62 = vsub.f32 %v5550_v46, %v1449_v41  ;;  %v1482_v53 = vsub.f32 %v5551_v9, %v1450_v17  ;;  %v4282_v11 = vpop.f32.mrb[32].mxu1 }
 0x179   : > { %2620 = vrsqrt.f32 %v4256_v35  ;;  %v1675_v2 = vsel %vm1674_vm5, %v4120_v18, %v1673_v13  ;;  %1861 = vst [vmem:[%s3628_s22 + $0x50] sm:$0xff] %v1829_v32  ;;  %v972_v47 = vmul.f32 %v2615_v40, %v4165_v22  ;;  %v4279_v27 = vsel %vm4261_vm4, %v779_v57, 1.0  ;;  %5552 = vst [vmem:[#allocation43_spill] sm:$0xff] %v4282_v11  ;;  %v4289_v13 = vpop.f32.mrb[33].mxu1 }
 0x17a   : > { %v749_v31 = vmul.f32 2.0, %v3715_v63  ;;  %v2617_v6 = vpop.eup %2616  ;;  %v1678_v41 = vsel %vm1676_vm6, %v1677_v55, %v1675_v2  ;;  %vm982_vm7 = vcmp.eq.f32.partialorder %v4186_v36, 0.0  ;;  %v983_v17 = vand.u32 2147483648, %v4186_v36  ;;  %v4315_v32 = vpop.f32.mrb[34].mxu1 }
 0x17b   : > { %2622 = vrsqrt.f32 %v4279_v27  ;;  %v1830_v57 = vsel %vm4105_vm10, %v1678_v41, 0.0  ;;  %v974_v63 = vsel %vm973_vm14, %v4165_v22, %v972_v47  ;;  %v979_v40 = vmul.f32 %v2617_v6, %v4186_v36  ;;  %v5555_v22 = vld [vmem:[#allocation6_spill] sm:$0xff]  ;;  %5556 = vst [vmem:[#allocation23_spill] sm:$0xff] %v4315_v32  ;;  %v5586_v41 = vld [vmem:[#allocation37_spill] sm:$0xff] }
 0x17c   : > { %vm1681_vm12 = vcmp.eq.f32.partialorder %v4233_v34, inf  ;;  %1862 = vst [vmem:[%s3628_s22 + $0x58] sm:$0xff] %v1830_v57  ;;  %v977_v18 = vsel %vm975_vm1, %v976_v20, %v974_v63  ;;  %vm812_vm0 = vcmp.gt.f32.partialorder %v780_v50, 0.0  ;;  %vm1513_vm5 = vcmp.gt.f32.partialorder %v1481_v62, 0.0  ;;  %v5559_v47 = vld [vmem:[#allocation34_spill] sm:$0xff] }
 0x17d   : > { %vm1514_vm6 = vcmp.gt.f32.partialorder %v1482_v53, 0.0  ;;  %v1129_v16 = vsel %vm4133_vm13, %v977_v18, 0.0  ;;  %v981_v55 = vsel %vm980_vm11, %v4186_v36, %v979_v40  ;;  %vm1683_vm10 = vcmp.eq.f32.partialorder %v4233_v34, 0.0  ;;  %vm4310_vm14 = vmand %vm463_vm2, %vm812_vm0  ;;  %v4335_v36 = vpop.f32.mrb[35].mxu1 }
 0x17e   : > { %v781_v20 = vsub.f32 %v5555_v22, %v749_v31  ;;  %1161 = vst [vmem:[%s3599_s19 + $0x58] sm:$0xff] %v1129_v16  ;;  %v984_v0 = vsel %vm982_vm7, %v983_v17, %v981_v55  ;;  %v1684_v46 = vand.u32 2147483648, %v4233_v34  ;;  %vm1688_vm13 = vcmp.eq.f32.partialorder %v4256_v35, inf  ;;  %vm4329_vm3 = vmand %vm463_vm2, %vm1513_vm5 }
 0x17f   : > { %v4324_v9 = vsel %vm4310_vm14, %v780_v50, 1.0  ;;  %5560 = vst [vmem:[#allocation30_spill] sm:$0xff] %v4335_v36  ;;  %v1130_v31 = vsel %vm4174_vm9, %v984_v0, 0.0  ;;  %vm1690_vm11 = vcmp.eq.f32.partialorder %v4256_v35, 0.0  ;;  %v1691_v50 = vand.u32 2147483648, %v4256_v35  ;;  %v5570_v36 = vld [vmem:[#allocation36_spill] sm:$0xff] }
 0x180   : > { %2624 = vrsqrt.f32 %v4324_v9  ;;  %vm5561_vm2 = vcmp.ne.s32.totalorder %v5538_v60, %v3289_v58  ;;  %1162 = vst [vmem:[%s3599_s19 + $0x60] sm:$0xff] %v1130_v31  ;;  %vm987_vm0 = vcmp.eq.f32.partialorder %v4279_v27, inf  ;;  %v4354_v28 = vsel %vm4329_vm3, %v1481_v62, 1.0 }
 0x181   : > { %vm4346_vm7 = vmand %vm5561_vm2, %vm1514_vm6  ;;  %v2619_v17 = vpop.eup %2618  ;;  %vm813_vm9 = vcmp.gt.f32.partialorder %v781_v20, 0.0  ;;  %vm466_vm5 = vcmp.ne.s32.totalorder %v5559_v47, %v3289_v58  ;;  %vm989_vm6 = vcmp.eq.f32.partialorder %v4279_v27, 0.0  ;;  %v990_v40 = vand.u32 2147483648, %v4279_v27 }
 0x182   : > { %v4358_v57 = vsel %vm4346_vm7, %v1482_v53, 1.0  ;;  %v1680_v63 = vmul.f32 %v2619_v17, %v4233_v34  ;;  %2626 = vrsqrt.f32 %v4354_v28  ;;  %vm4369_vm1 = vmand %vm5561_vm2, %vm813_vm9  ;;  %v4373_v53 = vpop.f32.mrb[36].mxu1  ;;  %v750_v16 = vmul.f32 2.0, %v3742_v24 }
 0x183   : > { %5566 = vst [vmem:[#allocation29_spill] sm:$0xff] %v4373_v53  ;;  %v2621_v18 = vpop.eup %2620  ;;  %2628 = vrsqrt.f32 %v4358_v57  ;;  %v1451_v55 = vmul.f32 2.0, %v3751_v29  ;;  %v1452_v22 = vmul.f32 2.0, %v3760_v33  ;;  %v4379_v0 = vpop.f32.mrb[37].mxu1  ;;  %vm994_vm9 = vcmp.eq.f32.partialorder %v4324_v9, inf }
 0x184   : > { %5567 = vst [vmem:[#allocation31_spill] sm:$0xff] %v4379_v0  ;;  %v1682_v60 = vsel %vm1681_vm12, %v4233_v34, %v1680_v63  ;;  %v1687_v31 = vmul.f32 %v2621_v18, %v4256_v35  ;;  %v4388_v17 = vsel %vm4369_vm1, %v781_v20, 1.0  ;;  %vm996_vm2 = vcmp.eq.f32.partialorder %v4324_v9, 0.0  ;;  %v4402_v34 = vpop.f32.mrb[38].mxu1  ;;  %v5569_v0 = vld [vmem:[#allocation35_spill] sm:$0xff] }
 0x185   : > { %v2623_v24 = vpop.eup %2622  ;;  %v1685_v29 = vsel %vm1683_vm10, %v1684_v46, %v1682_v60  ;;  %v997_v33 = vand.u32 2147483648, %v4324_v9  ;;  %2630 = vrsqrt.f32 %v4388_v17  ;;  %v5568_v60 = vld [vmem:[#allocation7_spill] sm:$0xff]  ;;  %v1483_v32 = vsub.f32 %v5569_v0, %v1451_v55 }
 0x186   : > { %v1689_v63 = vsel %vm1688_vm13, %v4256_v35, %v1687_v31  ;;  %v1831_v18 = vsel %vm4221_vm8, %v1685_v29, 0.0  ;;  %v986_v20 = vmul.f32 %v2623_v24, %v4279_v27  ;;  %v782_v53 = vsub.f32 %v5568_v60, %v750_v16  ;;  %v4410_v31 = vpop.f32.mrb[39].mxu1 }
 0x187   : > { %v1692_v46 = vsel %vm1690_vm11, %v1691_v50, %v1689_v63  ;;  %1863 = vst [vmem:[%s3628_s22 + $0x60] sm:$0xff] %v1831_v18  ;;  %v1484_v11 = vsub.f32 %v5570_v36, %v1452_v22  ;;  %v751_v35 = vmul.f32 2.0, %v3753_v51  ;;  %v752_v50 = vmul.f32 2.0, %v3785_v1  ;;  %v5571_v36 = vld [vmem:[#allocation39_spill] sm:$0xff]  ;;  %v5575_v1 = vld [vmem:[#allocation8_spill] sm:$0xff]  ;;  %v1385_v63 = vpop.xlane.xlu0 %1384 }
 0x188   : > { %v1832_v12 = vsel %vm4243_vm15, %v1692_v46, 0.0  ;;  %v988_v24 = vsel %vm987_vm0, %v4279_v27, %v986_v20  ;;  %vm814_vm8 = vcmp.gt.f32.partialorder %v782_v53, 0.0  ;;  %vm1515_vm10 = vcmp.gt.f32.partialorder %v1483_v32, 0.0 }
 0x189   : > { %1864 = vst [vmem:[%s3628_s22 + $0x68] sm:$0xff] %v1832_v12  ;;  %v991_v16 = vsel %vm989_vm6, %v990_v40, %v988_v24  ;;  %vm1516_vm13 = vcmp.gt.f32.partialorder %v1484_v11, 0.0  ;;  %vm1697_vm15 = vcmp.eq.f32.partialorder %v4354_v28, 0.0  ;;  %vm5572_vm0 = vcmp.ne.s32.totalorder %v5559_v47, %v3275_v49  ;;  %v5576_v40 = vld [vmem:[#allocation9_spill] sm:$0xff] }
 0x18a   : > { %v2625_v38 = vpop.eup %2624  ;;  %v1131_v55 = vsel %vm4261_vm4, %v991_v16, 0.0  ;;  %vm4430_vm12 = vmand %vm5572_vm0, %vm814_vm8  ;;  %v783_v27 = vsub.f32 %v5575_v1, %v751_v35  ;;  %v784_v22 = vsub.f32 %v5576_v40, %v752_v50  ;;  %v1698_v29 = vand.u32 2147483648, %v4354_v28 }
 0x18b   : > { %1163 = vst [vmem:[%s3599_s19 + $0x68] sm:$0xff] %v1131_v55  ;;  %v993_v0 = vmul.f32 %v2625_v38, %v4324_v9  ;;  %v4442_v54 = vsel %vm4430_vm12, %v782_v53, 1.0  ;;  %vm5577_vm6 = vmmov %vm5572_vm0  ;;  %vm1704_vm0 = vcmp.eq.f32.partialorder %v4358_v57, 0.0  ;;  %v1705_v20 = vand.u32 2147483648, %v4358_v57 }
 0x18c   : > { %vm4447_vm8 = vmand %vm5577_vm6, %vm1515_vm10  ;;  %v2627_v18 = vpop.eup %2626  ;;  %vm1001_vm11 = vcmp.eq.f32.partialorder %v4388_v17, inf  ;;  %2632 = vrsqrt.f32 %v4442_v54  ;;  %vm468_vm10 = vcmp.ne.s32.totalorder %v5571_v36, %v3289_v58  ;;  %v1453_v38 = vmul.f32 2.0, %v3792_v14 }
 0x18d   : > { %vm4459_vm4 = vmand %vm466_vm5, %vm1516_vm13  ;;  %v2629_v46 = vpop.eup %2628  ;;  %v995_v60 = vsel %vm994_vm9, %v4324_v9, %v993_v0  ;;  %v1694_v12 = vmul.f32 %v2627_v18, %v4354_v28  ;;  %v4469_v24 = vsel %vm4447_vm8, %v1483_v32, 1.0  ;;  %vm5582_vm9 = vcmp.eq.f32.partialorder %v4354_v28, inf  ;;  %v5587_v18 = vld [vmem:[#allocation38_spill] sm:$0xff] }
 0x18e   : > { %v4473_v35 = vsel %vm4459_vm4, %v1484_v11, 1.0  ;;  %v998_v50 = vsel %vm996_vm2, %v997_v33, %v995_v60  ;;  %v1701_v16 = vmul.f32 %v2629_v46, %v4358_v57  ;;  %2634 = vrsqrt.f32 %v4469_v24  ;;  %v5588_v46 = vld [vmem:[#allocation40_spill] sm:$0xff] }
 0x18f   : > { %v2631_v55 = vpop.eup %2630  ;;  %v1132_v32 = vsel %vm4310_vm14, %v998_v50, 0.0  ;;  %v1696_v11 = vsel %vm5582_vm9, %v4354_v28, %v1694_v12  ;;  %v1454_v1 = vmul.f32 2.0, %v3800_v45  ;;  %v753_v9 = vmul.f32 2.0, %v3794_v7  ;;  %v5592_v12 = vld [vmem:[#allocation10_spill] sm:$0xff] }
 0x190   : > { %1164 = vst [vmem:[%s3599_s19 + $0x70] sm:$0xff] %v1132_v32  ;;  %v1699_v33 = vsel %vm1697_vm15, %v1698_v29, %v1696_v11  ;;  %vm5583_vm2 = vcmp.eq.f32.partialorder %v4358_v57, inf  ;;  %v1000_v6 = vmul.f32 %v2631_v55, %v4388_v17  ;;  %2636 = vrsqrt.f32 %v4473_v35 }
 0x191   : > { %v1703_v14 = vsel %vm5583_vm2, %v4358_v57, %v1701_v16  ;;  %v1833_v45 = vsel %vm4329_vm3, %v1699_v33, 0.0  ;;  %vm1003_vm14 = vcmp.eq.f32.partialorder %v4388_v17, 0.0  ;;  %v1004_v7 = vand.u32 2147483648, %v4388_v17 }
 0x192   : > { %v1706_v40 = vsel %vm1704_vm0, %v1705_v20, %v1703_v14  ;;  %1865 = vst [vmem:[%s3628_s22 + $0x70] sm:$0xff] %v1833_v45  ;;  %v1002_v0 = vsel %vm1001_vm11, %v4388_v17, %v1000_v6  ;;  %vm1008_vm13 = vcmp.eq.f32.partialorder %v4442_v54, inf  ;;  %vm815_vm15 = vcmp.gt.f32.partialorder %v783_v27, 0.0 }
 0x193   : > { %v1834_v28 = vsel %vm4346_vm7, %v1706_v40, 0.0  ;;  %v1005_v57 = vsel %vm1003_vm14, %v1004_v7, %v1002_v0  ;;  %vm4514_vm3 = vmand %vm466_vm5, %vm815_vm15  ;;  %vm816_vm6 = vcmp.gt.f32.partialorder %v784_v22, 0.0  ;;  %v1485_v29 = vsub.f32 %v5586_v41, %v1453_v38 }
 0x194   : > { %1866 = vst [vmem:[%s3628_s22 + $0x78] sm:$0xff] %v1834_v28  ;;  %v1486_v20 = vsub.f32 %v5587_v18, %v1454_v1  ;;  %v1133_v17 = vsel %vm4369_vm1, %v1005_v57, 0.0  ;;  %v4526_v60 = vsel %vm4514_vm3, %v783_v27, 1.0  ;;  %vm5589_vm5 = vcmp.ne.s32.totalorder %v5571_v36, %v3275_v49 }
 0x195   : > { %vm4531_vm11 = vmand %vm5589_vm5, %vm816_vm6  ;;  %v785_v50 = vsub.f32 %v5592_v12, %v753_v9  ;;  %v754_v16 = vmul.f32 2.0, %v3829_v5  ;;  %1165 = vst [vmem:[%s3599_s19 + $0x78] sm:$0xff] %v1133_v17  ;;  %vm1010_vm0 = vcmp.eq.f32.partialorder %v4442_v54, 0.0  ;;  %v1011_v62 = vand.u32 2147483648, %v4442_v54  ;;  %v5598_v9 = vld [vmem:[#allocation11_spill] sm:$0xff] }
 0x196   : > { %2638 = vrsqrt.f32 %v4526_v60  ;;  %v2633_v27 = vpop.eup %2632  ;;  %v4545_v38 = vsel %vm4531_vm11, %v784_v22, 1.0  ;;  %vm1517_vm2 = vcmp.gt.f32.partialorder %v1485_v29, 0.0  ;;  %vm1518_vm14 = vcmp.gt.f32.partialorder %v1486_v20, 0.0  ;;  %vm5593_vm15 = vmmov %vm5589_vm5 }
 0x197   : > { %v1007_v5 = vmul.f32 %v2633_v27, %v4442_v54  ;;  %v1712_v55 = vand.u32 2147483648, %v4469_v24  ;;  %2640 = vrsqrt.f32 %v4545_v38  ;;  %vm4553_vm6 = vmand %vm5593_vm15, %vm1517_vm2  ;;  %vm817_vm5 = vcmp.gt.f32.partialorder %v785_v50, 0.0 }
 0x198   : > { %v2635_v11 = vpop.eup %2634  ;;  %vm1716_vm7 = vcmp.eq.f32.partialorder %v4473_v35, inf  ;;  %vm1718_vm9 = vcmp.eq.f32.partialorder %v4473_v35, 0.0  ;;  %vm4562_vm1 = vmand %vm468_vm10, %vm1518_vm14  ;;  %v4568_v1 = vsel %vm4553_vm6, %v1485_v29, 1.0  ;;  %v786_v33 = vsub.f32 %v5598_v9, %v754_v16 }
 0x199   : > { %v1009_v14 = vsel %vm1008_vm13, %v4442_v54, %v1007_v5  ;;  %v1708_v6 = vmul.f32 %v2635_v11, %v4469_v24  ;;  %v4577_v40 = vsel %vm4562_vm1, %v1486_v20, 1.0  ;;  %2642 = vrsqrt.f32 %v4568_v1  ;;  %vm4589_vm13 = vmand %vm468_vm10, %vm817_vm5  ;;  %v5606_v5 = vld [vmem:[#allocation41_spill] sm:$0xff]  ;;  %v5607_v11 = vld [vmem:[#allocation42_spill] sm:$0xff] }
 0x19a   : > { %v2637_v45 = vpop.eup %2636  ;;  %v1012_v7 = vsel %vm1010_vm0, %v1011_v62, %v1009_v14  ;;  %v1719_v28 = vand.u32 2147483648, %v4473_v35  ;;  %vm1015_vm2 = vcmp.eq.f32.partialorder %v4526_v60, inf  ;;  %vm1017_vm14 = vcmp.eq.f32.partialorder %v4526_v60, 0.0 }
 0x19b   : > { %vm470_vm15 = vcmp.ne.s32.totalorder %v5588_v46, %v3289_v58  ;;  %v1134_v54 = vsel %vm4430_vm12, %v1012_v7, 0.0  ;;  %vm5601_vm0 = vcmp.eq.f32.partialorder %v4469_v24, inf  ;;  %v1715_v41 = vmul.f32 %v2637_v45, %v4473_v35 }
 0x19c   : > { %v1710_v57 = vsel %vm5601_vm0, %v4469_v24, %v1708_v6  ;;  %2644 = vrsqrt.f32 %v4577_v40  ;;  %1166 = vst [vmem:[%s3599_s19 + $0x80] sm:$0xff] %v1134_v54  ;;  %vm5602_vm10 = vcmp.eq.f32.partialorder %v4469_v24, 0.0  ;;  %v1018_v29 = vand.u32 2147483648, %v4526_v60 }
 0x19d   : > { %v1713_v36 = vsel %vm5602_vm10, %v1712_v55, %v1710_v57  ;;  %vm1022_vm5 = vcmp.eq.f32.partialorder %v4545_v38, inf  ;;  %v1455_v18 = vmul.f32 2.0, %v3845_v61  ;;  %v1717_v51 = vsel %vm1716_vm7, %v4473_v35, %v1715_v41 }
 0x19e   : > { %v1835_v20 = vsel %vm4447_vm8, %v1713_v36, 0.0  ;;  %v4615_v17 = vsel %vm4589_vm13, %v785_v50, 1.0  ;;  %vm818_vm12 = vcmp.gt.f32.partialorder %v786_v33, 0.0  ;;  %v1720_v24 = vsel %vm1718_vm9, %v1719_v28, %v1717_v51  ;;  %v5608_v28 = vld [vmem:[#allocation12_spill] sm:$0xff] }
 0x19f   : > { %1867 = vst [vmem:[%s3628_s22 + $0x80] sm:$0xff] %v1835_v20  ;;  %vm1024_vm0 = vcmp.eq.f32.partialorder %v4545_v38, 0.0  ;;  %v1025_v61 = vand.u32 2147483648, %v4545_v38  ;;  %2646 = vrsqrt.f32 %v4615_v17  ;;  %vm5603_vm7 = vcmp.ne.s32.totalorder %v5588_v46, %v3275_v49 }
 0x1a0   : > { %vm4626_vm10 = vmand %vm5603_vm7, %vm818_vm12  ;;  %v2639_v12 = vpop.eup %2638  ;;  %v1836_v50 = vsel %vm4459_vm4, %v1720_v24, 0.0  ;;  %vm1723_vm8 = vcmp.eq.f32.partialorder %v4568_v1, inf  ;;  %v1456_v16 = vmul.f32 2.0, %v3857_v23  ;;  %vm1725_vm9 = vcmp.eq.f32.partialorder %v4568_v1, 0.0 }
 0x1a1   : > { %v4635_v35 = vsel %vm4626_vm10, %v786_v33, 1.0  ;;  %1868 = vst [vmem:[%s3628_s22 + $0x88] sm:$0xff] %v1836_v50  ;;  %v1014_v62 = vmul.f32 %v2639_v12, %v4526_v60  ;;  %v1726_v27 = vand.u32 2147483648, %v4568_v1  ;;  %v2641_v53 = vpop.eup %2640  ;;  %v1487_v55 = vsub.f32 %v5606_v5, %v1455_v18 }
 0x1a2   : > { %2648 = vrsqrt.f32 %v4635_v35  ;;  %v1488_v9 = vsub.f32 %v5607_v11, %v1456_v16  ;;  %v755_v23 = vmul.f32 2.0, %v3847_v43  ;;  %v1021_v14 = vmul.f32 %v2641_v53, %v4545_v38 }
 0x1a3   : > { %v1016_v33 = vsel %vm1015_vm2, %v4526_v60, %v1014_v62  ;;  %v756_v6 = vmul.f32 2.0, %v3873_v4  ;;  %v2643_v45 = vpop.eup %2642  ;;  %vm1519_vm4 = vcmp.gt.f32.partialorder %v1487_v55, 0.0  ;;  %vm5609_vm2 = vmmov %vm5603_vm7  ;;  %v5612_v60 = vld [vmem:[#allocation13_spill] sm:$0xff]  ;;  %v1733_v18 = vand.u32 2147483648, %v4577_v40 }
 0x1a4   : > { %v1019_v7 = vsel %vm1017_vm14, %v1018_v29, %v1016_v33  ;;  %vm1520_vm12 = vcmp.gt.f32.partialorder %v1488_v9, 0.0  ;;  %v787_v54 = vsub.f32 %v5608_v28, %v755_v23  ;;  %v1023_v57 = vsel %vm1022_vm5, %v4545_v38, %v1021_v14  ;;  %vm4667_vm7 = vmand %vm5609_vm2, %vm1519_vm4 }
 0x1a5   : > { %v1135_v43 = vsel %vm4514_vm3, %v1019_v7, 0.0  ;;  %v1722_v41 = vmul.f32 %v2643_v45, %v4568_v1  ;;  %v788_v36 = vsub.f32 %v5612_v60, %v756_v6  ;;  %v1026_v2 = vsel %vm1024_vm0, %v1025_v61, %v1023_v57  ;;  %vm4679_vm3 = vmand %vm470_vm15, %vm1520_vm12 }
 0x1a6   : > { %v2645_v29 = vpop.eup %2644  ;;  %1167 = vst [vmem:[%s3599_s19 + $0x88] sm:$0xff] %v1135_v43  ;;  %v4685_v20 = vsel %vm4667_vm7, %v1487_v55, 1.0  ;;  %vm819_vm14 = vcmp.gt.f32.partialorder %v787_v54, 0.0  ;;  %v1136_v24 = vsel %vm4531_vm11, %v1026_v2, 0.0  ;;  %v4695_v12 = vsel %vm4679_vm3, %v1488_v9, 1.0  ;;  %v5622_v43 = vld [vmem:[#allocation2_spill] sm:$0xff] }
 0x1a7   : > { %v1724_v38 = vsel %vm1723_vm8, %v4568_v1, %v1722_v41  ;;  %v1729_v61 = vmul.f32 %v2645_v29, %v4577_v40  ;;  %1168 = vst [vmem:[%s3599_s19 + $0x90] sm:$0xff] %v1136_v24  ;;  %vm1029_vm5 = vcmp.eq.f32.partialorder %v4615_v17, inf  ;;  %vm1031_vm0 = vcmp.eq.f32.partialorder %v4615_v17, 0.0  ;;  %vm4706_vm11 = vmand %vm470_vm15, %vm819_vm14  ;;  %v5629_v24 = vld [vmem:[#allocation15_spill] sm:$0xff] }
 0x1a8   : > { %v1727_v50 = vsel %vm1725_vm9, %v1726_v27, %v1724_v38  ;;  %2650 = vrsqrt.f32 %v4685_v20  ;;  %vm472_vm8 = vcmp.ne.s32.totalorder %v4139_v30, %v3289_v58  ;;  %vm5617_vm9 = vcmp.eq.f32.partialorder %v4577_v40, inf }
 0x1a9   : > { %v2647_v16 = vpop.eup %2646  ;;  %v1731_v1 = vsel %vm5617_vm9, %v4577_v40, %v1729_v61  ;;  %v1837_v62 = vsel %vm4553_vm6, %v1727_v50, 0.0  ;;  %v1032_v27 = vand.u32 2147483648, %v4615_v17  ;;  %2652 = vrsqrt.f32 %v4695_v12 }
 0x1aa   : > { %vm5618_vm15 = vcmp.eq.f32.partialorder %v4577_v40, 0.0  ;;  %1869 = vst [vmem:[%s3628_s22 + $0x90] sm:$0xff] %v1837_v62  ;;  %v1028_v53 = vmul.f32 %v2647_v16, %v4615_v17  ;;  %vm1036_vm4 = vcmp.eq.f32.partialorder %v4635_v35, inf  ;;  %vm1038_vm12 = vcmp.eq.f32.partialorder %v4635_v35, 0.0 }
 0x1ab   : > { %v1734_v46 = vsel %vm5618_vm15, %v1733_v18, %v1731_v1  ;;  %v4729_v32 = vsel %vm4706_vm11, %v787_v54, 1.0  ;;  %vm820_vm6 = vcmp.gt.f32.partialorder %v788_v36, 0.0  ;;  %v1457_v40 = vmul.f32 2.0, %v3886_v19 }
 0x1ac   : > { %v2649_v5 = vpop.eup %2648  ;;  %v1838_v55 = vsel %vm4562_vm1, %v1734_v46, 0.0  ;;  %v1030_v11 = vsel %vm1029_vm5, %v4615_v17, %v1028_v53  ;;  %2654 = vrsqrt.f32 %v4729_v32  ;;  %vm5619_vm1 = vcmp.ne.s32.totalorder %v4139_v30, %v3275_v49 }
 0x1ad   : > { %1870 = vst [vmem:[%s3628_s22 + $0x98] sm:$0xff] %v1838_v55  ;;  %v1035_v9 = vmul.f32 %v2649_v5, %v4635_v35  ;;  %vm4741_vm2 = vmand %vm5619_vm1, %vm820_vm6  ;;  %v1458_v23 = vmul.f32 2.0, %v3894_v26  ;;  %v1033_v19 = vsel %vm1031_vm0, %v1032_v27, %v1030_v11  ;;  %v1039_v33 = vand.u32 2147483648, %v4635_v35 }
 0x1ae   : > { %vm1737_vm14 = vcmp.eq.f32.partialorder %v4685_v20, inf  ;;  %v4752_v14 = vsel %vm4741_vm2, %v788_v36, 1.0  ;;  %v1137_v6 = vsel %vm4589_vm13, %v1033_v19, 0.0  ;;  %vm1739_vm5 = vcmp.eq.f32.partialorder %v4685_v20, 0.0 }
 0x1af   : > { %v1037_v45 = vsel %vm1036_vm4, %v4635_v35, %v1035_v9  ;;  %2656 = vrsqrt.f32 %v4752_v14  ;;  %1169 = vst [vmem:[%s3599_s19 + $0x98] sm:$0xff] %v1137_v6  ;;  %v1740_v17 = vand.u32 2147483648, %v4685_v20  ;;  %vm1744_vm0 = vcmp.eq.f32.partialorder %v4695_v12, inf }
 0x1b0   : > { %v1040_v26 = vsel %vm1038_vm12, %v1039_v33, %v1037_v45  ;;  %v1489_v7 = vsub.f32 %v3876_v52, %v1457_v40  ;;  %v1490_v28 = vsub.f32 %v3879_v10, %v1458_v23  ;;  %v757_v54 = vmul.f32 2.0, %v3888_v8  ;;  %vm5623_vm12 = vmmov %vm5619_vm1  ;;  %v5626_v10 = vld [vmem:[#allocation14_spill] sm:$0xff]  ;;  %v5630_v40 = vld [vmem:[#allocation24_spill] sm:$0xff] }
 0x1b1   : > { %v1138_v0 = vsel %vm4626_vm10, %v1040_v26, 0.0  ;;  %v425_v57 = vadd.s32 96, %v5622_v43  ;;  %vm1746_vm13 = vcmp.eq.f32.partialorder %v4695_v12, 0.0  ;;  %v1747_v35 = vand.u32 2147483648, %v4695_v12  ;;  %v5644_v52 = vld [vmem:[#allocation47_spill] sm:$0xff] }
 0x1b2   : > { %1170 = vst [vmem:[%s3599_s19 + $0xa0] sm:$0xff] %v1138_v0  ;;  %vm1521_vm9 = vcmp.gt.f32.partialorder %v1489_v7, 0.0  ;;  %v758_v41 = vmul.f32 2.0, %v3916_v25  ;;  %v2651_v60 = vpop.eup %2650  ;;  %vm1043_vm15 = vcmp.eq.f32.partialorder %v4729_v32, inf  ;;  %vm1045_vm4 = vcmp.eq.f32.partialorder %v4729_v32, 0.0 }
 0x1b3   : > { %vm1522_vm10 = vcmp.gt.f32.partialorder %v1490_v28, 0.0  ;;  %vm4781_vm6 = vmand %vm5623_vm12, %vm1521_vm9  ;;  %v789_v8 = vsub.f32 %v5626_v10, %v757_v54  ;;  %v2653_v36 = vpop.eup %2652  ;;  %v1736_v29 = vmul.f32 %v2651_v60, %v4685_v20  ;;  %v1046_v25 = vand.u32 2147483648, %v4729_v32 }
 0x1b4   : > { %vm4791_vm1 = vmand %vm472_vm8, %vm1522_vm10  ;;  %v4797_v18 = vsel %vm4781_vm6, %v1489_v7, 1.0  ;;  %v790_v38 = vsub.f32 %v5629_v24, %v758_v41  ;;  %v1743_v61 = vmul.f32 %v2653_v36, %v4695_v12  ;;  %v4807_v16 = vadd.s32 %v5534_v15, %v425_v57 }
 0x1b5   : > { %v4803_v50 = vsel %vm4791_vm1, %v1490_v28, 1.0  ;;  %2658 = vrsqrt.f32 %v4797_v18  ;;  %v1738_v1 = vsel %vm1737_vm14, %v4685_v20, %v1736_v29  ;;  %v1459_v62 = vmul.f32 2.0, %v3929_v44 }
 0x1b6   : > { %2660 = vrsqrt.f32 %v4803_v50  ;;  %v1427_v27 = vadd.f32 %v3286_v56, %v1385_v63  ;;  %v2655_v46 = vpop.eup %2654  ;;  %v1741_v53 = vsel %vm1739_vm5, %v1740_v17, %v1738_v1  ;;  %v1745_v5 = vsel %vm1744_vm0, %v4695_v12, %v1743_v61  ;;  %v5635_v17 = vld [vmem:[#allocation45_spill] sm:$0xff] }
 0x1b7   : > { %v1460_v55 = vmul.f32 2.0, %v3947_v39  ;;  %v1428_v11 = vadd.f32 %v5630_v40, %v1385_v63  ;;  %v1748_v9 = vsel %vm1746_vm13, %v1747_v35, %v1745_v5  ;;  %v1839_v44 = vsel %vm4667_vm7, %v1741_v53, 0.0  ;;  %v5636_v35 = vld [vmem:[#allocation16_spill] sm:$0xff] }
 0x1b8   : > { %v1042_v23 = vmul.f32 %v2655_v46, %v4729_v32  ;;  %vm1050_vm14 = vcmp.eq.f32.partialorder %v4752_v14, inf  ;;  %v1840_v19 = vsel %vm4679_vm3, %v1748_v9, 0.0  ;;  %1871 = vst [vmem:[%s3628_s22 + $0xa0] sm:$0xff] %v1839_v44  ;;  %vm821_vm5 = vcmp.gt.f32.partialorder %v789_v8, 0.0  ;;  %v5643_v46 = vld [vmem:[#allocation46_spill] sm:$0xff] }
 0x1b9   : > { %v2657_v20 = vpop.eup %2656  ;;  %vm473_vm0 = vcmp.ne.s32.totalorder %v4807_v16, %v3275_v49  ;;  %vm822_vm9 = vcmp.gt.f32.partialorder %v790_v38, 0.0  ;;  %1872 = vst [vmem:[%s3628_s22 + $0xa8] sm:$0xff] %v1840_v19  ;;  %v1053_v12 = vand.u32 2147483648, %v4752_v14  ;;  %vm4842_vm7 = vmand %vm472_vm8, %vm821_vm5  ;;  %v1491_v33 = vsub.f32 %v1427_v27, %v1459_v62 }
 0x1ba   : > { %v1044_v39 = vsel %vm1043_vm15, %v4729_v32, %v1042_v23  ;;  %v1049_v4 = vmul.f32 %v2657_v20, %v4752_v14  ;;  %v4850_v45 = vsel %vm4842_vm7, %v789_v8, 1.0  ;;  %vm4855_vm3 = vmand %vm473_vm0, %vm822_vm9  ;;  %v1492_v30 = vsub.f32 %v1428_v11, %v1460_v55  ;;  %v5645_v23 = vld [vmem:[#allocation49_spill] sm:$0xff] }
 0x1bb   : > { %v1047_v6 = vsel %vm1045_vm4, %v1046_v25, %v1044_v39  ;;  %v759_v7 = vmul.f32 2.0, %v5635_v17  ;;  %vm1052_vm8 = vcmp.eq.f32.partialorder %v4752_v14, 0.0  ;;  %2662 = vrsqrt.f32 %v4850_v45  ;;  %v5646_v39 = vld [vmem:[#allocation17_spill] sm:$0xff]  ;;  %v5647_v17 = vld [vmem:[#allocation48_spill] sm:$0xff] }
 0x1bc   : > { %v1139_v0 = vsel %vm4706_vm11, %v1047_v6, 0.0  ;;  %v1051_v32 = vsel %vm1050_vm14, %v4752_v14, %v1049_v4  ;;  %vm1751_vm13 = vcmp.eq.f32.partialorder %v4797_v18, inf  ;;  %vm1753_vm15 = vcmp.eq.f32.partialorder %v4797_v18, 0.0 }
 0x1bd   : > { %1171 = vst [vmem:[%s3599_s19 + $0xa8] sm:$0xff] %v1139_v0  ;;  %v1054_v28 = vsel %vm1052_vm8, %v1053_v12, %v1051_v32  ;;  %v4872_v54 = vsel %vm4855_vm3, %v790_v38, 1.0  ;;  %v1754_v57 = vand.u32 2147483648, %v4797_v18  ;;  %vm474_vm11 = vcmp.ne.s32.totalorder %v4807_v16, %v3289_v58 }
 0x1be   : > { %v1140_v47 = vsel %vm4741_vm2, %v1054_v28, 0.0  ;;  %2664 = vrsqrt.f32 %v4872_v54  ;;  %vm1758_vm4 = vcmp.eq.f32.partialorder %v4803_v50, inf  ;;  %vm1523_vm10 = vcmp.gt.f32.partialorder %v1491_v33, 0.0 }
 0x1bf   : > { %v2659_v14 = vpop.eup %2658  ;;  %1172 = vst [vmem:[%s3599_s19 + $0xb0] sm:$0xff] %v1140_v47  ;;  %vm1524_vm12 = vcmp.gt.f32.partialorder %v1492_v30, 0.0  ;;  %v791_v41 = vsub.f32 %v5636_v35, %v759_v7  ;;  %vm1760_vm2 = vcmp.eq.f32.partialorder %v4803_v50, 0.0  ;;  %v1761_v22 = vand.u32 2147483648, %v4803_v50  ;;  %vm4890_vm5 = vmand %vm473_vm0, %vm1523_vm10  ;;  %v5651_v35 = vld [vmem:[#allocation50_spill] sm:$0xff] }
 0x1c0   : > { %v2661_v60 = vpop.eup %2660  ;;  %v1750_v10 = vmul.f32 %v2659_v14, %v4797_v18  ;;  %vm1059_vm9 = vcmp.eq.f32.partialorder %v4850_v45, 0.0  ;;  %vm4899_vm8 = vmand %vm474_vm11, %vm1524_vm12  ;;  %v4905_v29 = vsel %vm4890_vm5, %v1491_v33, 1.0  ;;  %v1060_v24 = vand.u32 2147483648, %v4850_v45 }
 0x1c1   : > { %v1757_v63 = vmul.f32 %v2661_v60, %v4803_v50  ;;  %vm823_vm14 = vcmp.gt.f32.partialorder %v791_v41, 0.0  ;;  %v4913_v38 = vsel %vm4899_vm8, %v1492_v30, 1.0  ;;  %2666 = vrsqrt.f32 %v4905_v29 }
 0x1c2   : > { %v1752_v25 = vsel %vm1751_vm13, %v4797_v18, %v1750_v10  ;;  %vm4919_vm0 = vmand %vm474_vm11, %vm823_vm14  ;;  %v426_v27 = vadd.s32 104, %v5622_v43  ;;  %v760_v53 = vmul.f32 2.0, %v5643_v46  ;;  %vm1064_vm13 = vcmp.eq.f32.partialorder %v4872_v54, inf  ;;  %v1387_v18 = vpop.xlane.xlu1 %1386 }
 0x1c3   : > { %v1755_v1 = vsel %vm1753_vm15, %v1754_v57, %v1752_v25  ;;  %v1759_v62 = vsel %vm1758_vm4, %v4803_v50, %v1757_v63  ;;  %2668 = vrsqrt.f32 %v4913_v38  ;;  %vm1066_vm15 = vcmp.eq.f32.partialorder %v4872_v54, 0.0 }
 0x1c4   : > { %v1762_v5 = vsel %vm1760_vm2, %v1761_v22, %v1759_v62  ;;  %v1841_v16 = vsel %vm4781_vm6, %v1755_v1, 0.0  ;;  %v1067_v11 = vand.u32 2147483648, %v4872_v54  ;;  %v4943_v50 = vsel %vm4919_vm0, %v791_v41, 1.0  ;;  %v5652_v22 = vld [vmem:[#allocation18_spill] sm:$0xff] }
 0x1c5   : > { %v1842_v55 = vsel %vm4791_vm1, %v1762_v5, 0.0  ;;  %1873 = vst [vmem:[%s3628_s22 + $0xb0] sm:$0xff] %v1841_v16  ;;  %v2663_v9 = vpop.eup %2662  ;;  %vm1765_vm6 = vcmp.eq.f32.partialorder %v4905_v29, inf  ;;  %2670 = vrsqrt.f32 %v4943_v50  ;;  %v1461_v44 = vmul.f32 2.0, %v5644_v52 }
 0x1c6   : > { %1874 = vst [vmem:[%s3628_s22 + $0xb8] sm:$0xff] %v1842_v55  ;;  %v1462_v2 = vmul.f32 2.0, %v5645_v23  ;;  %v1056_v20 = vmul.f32 %v2663_v9, %v4850_v45  ;;  %v443_v19 = vadd.s32 %v5534_v15, %v426_v27  ;;  %v792_v4 = vsub.f32 %v5646_v39, %v760_v53  ;;  %v5655_v53 = vld [vmem:[#allocation19_spill] sm:$0xff] }
 0x1c7   : > { %v1429_v12 = vadd.f32 %v3286_v56, %v1387_v18  ;;  %vm1767_vm1 = vcmp.eq.f32.partialorder %v4905_v29, 0.0  ;;  %v1768_v6 = vand.u32 2147483648, %v4905_v29  ;;  %v1430_v30 = vadd.f32 %v5630_v40, %v1387_v18 }
 0x1c8   : > { %v2665_v33 = vpop.eup %2664  ;;  %v761_v7 = vmul.f32 2.0, %v5647_v17  ;;  %vm5648_vm11 = vcmp.eq.f32.partialorder %v4850_v45, inf  ;;  %vm475_vm4 = vcmp.ne.s32.totalorder %v443_v19, %v3275_v49  ;;  %vm824_vm10 = vcmp.gt.f32.partialorder %v792_v4, 0.0  ;;  %v1389_v17 = vpop.xlane.xlu0 %1388 }
 0x1c9   : > { %v1058_v0 = vsel %vm5648_vm11, %v4850_v45, %v1056_v20  ;;  %v1063_v32 = vmul.f32 %v2665_v33, %v4872_v54  ;;  %vm4967_vm12 = vmand %vm475_vm4, %vm824_vm10  ;;  %v1493_v57 = vsub.f32 %v1429_v12, %v1461_v44  ;;  %v1494_v14 = vsub.f32 %v1430_v30, %v1462_v2 }
 0x1ca   : > { %v1061_v28 = vsel %vm1059_vm9, %v1060_v24, %v1058_v0  ;;  %v762_v41 = vmul.f32 2.0, %v5651_v35  ;;  %v4979_v45 = vsel %vm4967_vm12, %v792_v4, 1.0  ;;  %v793_v63 = vsub.f32 %v5652_v22, %v761_v7  ;;  %v5663_v0 = vld [vmem:[#allocation53_spill] sm:$0xff] }
 0x1cb   : > { %v1141_v60 = vsel %vm4842_vm7, %v1061_v28, 0.0  ;;  %v1065_v10 = vsel %vm1064_vm13, %v4872_v54, %v1063_v32  ;;  %v2667_v25 = vpop.eup %2666  ;;  %2672 = vrsqrt.f32 %v4979_v45  ;;  %vm476_vm2 = vcmp.ne.s32.totalorder %v443_v19, %v3289_v58 }
 0x1cc   : > { %1173 = vst [vmem:[%s3599_s19 + $0xb8] sm:$0xff] %v1141_v60  ;;  %v1068_v24 = vsel %vm1066_vm15, %v1067_v11, %v1065_v10  ;;  %v427_v51 = vadd.s32 112, %v5622_v43  ;;  %v1764_v62 = vmul.f32 %v2667_v25, %v4905_v29  ;;  %vm1772_vm7 = vcmp.eq.f32.partialorder %v4913_v38, inf }
 0x1cd   : > { %v1142_v1 = vsel %vm4855_vm3, %v1068_v24, 0.0  ;;  %vm1525_vm14 = vcmp.gt.f32.partialorder %v1493_v57, 0.0  ;;  %v2669_v27 = vpop.eup %2668  ;;  %v1775_v46 = vand.u32 2147483648, %v4913_v38  ;;  %vm1526_vm9 = vcmp.gt.f32.partialorder %v1494_v14, 0.0 }
 0x1ce   : > { %1174 = vst [vmem:[%s3599_s19 + $0xc0] sm:$0xff] %v1142_v1  ;;  %vm4996_vm13 = vmand %vm475_vm4, %vm1525_vm14  ;;  %vm825_vm15 = vcmp.gt.f32.partialorder %v793_v63, 0.0  ;;  %v794_v26 = vsub.f32 %v5655_v53, %v762_v41  ;;  %v1766_v5 = vsel %vm1765_vm6, %v4905_v29, %v1764_v62  ;;  %v1771_v16 = vmul.f32 %v2669_v27, %v4913_v38  ;;  %v5664_v41 = vld [vmem:[#allocation52_spill] sm:$0xff] }
 0x1cf   : > { %vm1774_vm3 = vcmp.eq.f32.partialorder %v4913_v38, 0.0  ;;  %vm5008_vm11 = vmand %vm476_vm2, %vm1526_vm9  ;;  %v5014_v55 = vsel %vm4996_vm13, %v1493_v57, 1.0  ;;  %v2671_v11 = vpop.eup %2670  ;;  %v1769_v9 = vsel %vm1767_vm1, %v1768_v6, %v1766_v5  ;;  %v5024_v44 = vadd.s32 %v5534_v15, %v427_v51  ;;  %v5662_v6 = vld [vmem:[#allocation51_spill] sm:$0xff]  ;;  %v5666_v27 = vld [vmem:[#allocation20_spill] sm:$0xff] }
 0x1d0   : > { %v5020_v52 = vsel %vm5008_vm11, %v1494_v14, 1.0  ;;  %2674 = vrsqrt.f32 %v5014_v55  ;;  %v1773_v23 = vsel %vm1772_vm7, %v4913_v38, %v1771_v16  ;;  %v1843_v2 = vsel %vm4890_vm5, %v1769_v9, 0.0  ;;  %vm5036_vm1 = vmand %vm476_vm2, %vm825_vm15  ;;  %v5667_v16 = vld [vmem:[#allocation21_spill] sm:$0xff] }
 0x1d1   : > { %v1070_v29 = vmul.f32 %v2671_v11, %v4943_v50  ;;  %vm1071_vm6 = vcmp.eq.f32.partialorder %v4943_v50, inf  ;;  %v1776_v39 = vsel %vm1774_vm3, %v1775_v46, %v1773_v23  ;;  %1875 = vst [vmem:[%s3628_s22 + $0xc0] sm:$0xff] %v1843_v2  ;;  %vm1073_vm4 = vcmp.eq.f32.partialorder %v4943_v50, 0.0 }
 0x1d2   : > { %v1074_v38 = vand.u32 2147483648, %v4943_v50  ;;  %2676 = vrsqrt.f32 %v5020_v52  ;;  %v1844_v8 = vsel %vm4899_vm8, %v1776_v39, 0.0  ;;  %vm1078_vm5 = vcmp.eq.f32.partialorder %v4979_v45, inf }
 0x1d3   : > { %v1072_v4 = vsel %vm1071_vm6, %v4943_v50, %v1070_v29  ;;  %vm1080_vm10 = vcmp.eq.f32.partialorder %v4979_v45, 0.0  ;;  %1876 = vst [vmem:[%s3628_s22 + $0xc8] sm:$0xff] %v1844_v8  ;;  %v5052_v12 = vsel %vm5036_vm1, %v793_v63, 1.0  ;;  %vm477_vm2 = vcmp.ne.s32.totalorder %v5024_v44, %v3275_v49  ;;  %v5665_v63 = vld [vmem:[#allocation26_spill] sm:$0xff] }
 0x1d4   : > { %v1075_v19 = vsel %vm1073_vm4, %v1074_v38, %v1072_v4  ;;  %vm826_vm7 = vcmp.gt.f32.partialorder %v794_v26, 0.0  ;;  %v1081_v33 = vand.u32 2147483648, %v4979_v45  ;;  %2678 = vrsqrt.f32 %v5052_v12  ;;  %v5688_v4 = vld [vmem:[#allocation25_spill] sm:$0xff] }
 0x1d5   : > { %v1143_v36 = vsel %vm4919_vm0, %v1075_v19, 0.0  ;;  %vm5063_vm8 = vmand %vm477_vm2, %vm826_vm7  ;;  %v1463_v30 = vmul.f32 2.0, %v5662_v6  ;;  %v2673_v7 = vpop.eup %2672  ;;  %vm1779_vm14 = vcmp.eq.f32.partialorder %v5014_v55, inf  ;;  %vm1781_vm0 = vcmp.eq.f32.partialorder %v5014_v55, 0.0  ;;  %v1391_v19 = vpop.xlane.xlu1 %1390 }
 0x1d6   : > { %1175 = vst [vmem:[%s3599_s19 + $0xc8] sm:$0xff] %v1143_v36  ;;  %v5073_v61 = vsel %vm5063_vm8, %v794_v26, 1.0  ;;  %v1464_v32 = vmul.f32 2.0, %v5663_v0  ;;  %v1077_v28 = vmul.f32 %v2673_v7, %v4979_v45  ;;  %v1782_v57 = vand.u32 2147483648, %v5014_v55 }
 0x1d7   : > { %vm1786_vm9 = vcmp.eq.f32.partialorder %v5020_v52, inf  ;;  %2680 = vrsqrt.f32 %v5073_v61  ;;  %v1431_v14 = vadd.f32 %v3286_v56, %v1389_v17  ;;  %v1432_v35 = vadd.f32 %v5630_v40, %v1389_v17  ;;  %v5678_v17 = vld [vmem:[#allocation44_spill] sm:$0xff] }
 0x1d8   : > { %v763_v60 = vmul.f32 2.0, %v5664_v41  ;;  %v1079_v10 = vsel %vm1078_vm5, %v4979_v45, %v1077_v28  ;;  %vm478_vm3 = vcmp.ne.s32.totalorder %v5024_v44, %v3289_v58  ;;  %v428_v22 = vadd.s32 120, %v5622_v43  ;;  %v5679_v28 = vld [vmem:[#allocation27_spill] sm:$0xff] }
 0x1d9   : > { %v764_v25 = vmul.f32 2.0, %v5665_v63  ;;  %v1082_v51 = vsel %vm1080_vm10, %v1081_v33, %v1079_v10  ;;  %v1495_v1 = vsub.f32 %v1431_v14, %v1463_v30  ;;  %v1496_v62 = vsub.f32 %v1432_v35, %v1464_v32 }
 0x1da   : > { %v2675_v24 = vpop.eup %2674  ;;  %v795_v46 = vsub.f32 %v5666_v27, %v763_v60  ;;  %v1144_v53 = vsel %vm4967_vm12, %v1082_v51, 0.0  ;;  %v5098_v5 = vadd.s32 %v5534_v15, %v428_v22  ;;  %v1789_v9 = vand.u32 2147483648, %v5020_v52  ;;  %v5681_v27 = vld [vmem:[#allocation22_spill] sm:$0xff] }
 0x1db   : > { %v1778_v26 = vmul.f32 %v2675_v24, %v5014_v55  ;;  %v796_v43 = vsub.f32 %v5667_v16, %v764_v25  ;;  %1176 = vst [vmem:[%s3599_s19 + $0xd0] sm:$0xff] %v1144_v53  ;;  %vm1527_vm6 = vcmp.gt.f32.partialorder %v1495_v1, 0.0  ;;  %vm1528_vm4 = vcmp.gt.f32.partialorder %v1496_v62, 0.0  ;;  %v5680_v25 = vld [vmem:[#allocation28_spill] sm:$0xff] }
 0x1dc   : > { %v2677_v11 = vpop.eup %2676  ;;  %vm5110_vm12 = vmand %vm477_vm2, %vm1527_vm6  ;;  %vm479_vm10 = vcmp.ne.s32.totalorder %v5098_v5, %v3275_v49  ;;  %vm1085_vm15 = vcmp.eq.f32.partialorder %v5052_v12, inf  ;;  %vm5672_vm2 = vcmp.gt.f32.partialorder %v795_v46, 0.0  ;;  %v1088_v33 = vand.u32 2147483648, %v5052_v12 }
 0x1dd   : > { %v1780_v45 = vsel %vm1779_vm14, %v5014_v55, %v1778_v26  ;;  %v1785_v47 = vmul.f32 %v2677_v11, %v5020_v52  ;;  %vm828_vm7 = vcmp.gt.f32.partialorder %v796_v43, 0.0  ;;  %vm1087_vm14 = vcmp.eq.f32.partialorder %v5052_v12, 0.0  ;;  %vm5123_vm5 = vmand %vm478_vm3, %vm1528_vm4 }
 0x1de   : > { %v1783_v23 = vsel %vm1781_vm0, %v1782_v57, %v1780_v45  ;;  %v5129_v29 = vsel %vm5110_vm12, %v1495_v1, 1.0  ;;  %v2679_v39 = vpop.eup %2678  ;;  %v5138_v8 = vsel %vm5123_vm5, %v1496_v62, 1.0  ;;  %vm5145_vm0 = vmand %vm478_vm3, %vm5672_vm2  ;;  %v1095_v30 = vand.u32 2147483648, %v5073_v61 }
 0x1df   : > { %v1787_v55 = vsel %vm1786_vm9, %v5020_v52, %v1785_v47  ;;  %v1845_v38 = vsel %vm4996_vm13, %v1783_v23, 0.0  ;;  %2682 = vrsqrt.f32 %v5129_v29  ;;  %vm5675_vm9 = vcmp.eq.f32.partialorder %v5020_v52, 0.0  ;;  %vm5159_vm6 = vmand %vm479_vm10, %vm828_vm7 }
 0x1e0   : > { %v1790_v54 = vsel %vm5675_vm9, %v1789_v9, %v1787_v55  ;;  %1877 = vst [vmem:[%s3628_s22 + $0xd0] sm:$0xff] %v1845_v38  ;;  %v1084_v36 = vmul.f32 %v2679_v39, %v5052_v12  ;;  %vm1092_vm13 = vcmp.eq.f32.partialorder %v5073_v61, inf  ;;  %2684 = vrsqrt.f32 %v5138_v8  ;;  %v2697_v9 = vld [vmem:[%s2866_s26] sm:$0xff] }
 0x1e1   : > { %v2681_v6 = vpop.eup %2680  ;;  %v1846_v52 = vsel %vm5008_vm11, %v1790_v54, 0.0  ;;  %v1465_v7 = vmul.f32 2.0, %v5678_v17  ;;  %v1466_v57 = vmul.f32 2.0, %v5679_v28  ;;  %v1433_v14 = vadd.f32 %v3286_v56, %v1391_v19 }
 0x1e2   : > { %1878 = vst [vmem:[%s3628_s22 + $0xd8] sm:$0xff] %v1846_v52  ;;  %v1086_v0 = vsel %vm1085_vm15, %v5052_v12, %v1084_v36  ;;  %v1091_v32 = vmul.f32 %v2681_v6, %v5073_v61  ;;  %v5179_v35 = vsel %vm5145_vm0, %v795_v46, 1.0  ;;  %v5183_v41 = vsel %vm5159_vm6, %v796_v43, 1.0  ;;  %v5196_v12 = vld [vmem:[%s5386_s5] ss:$0 sm:$0xff] }
 0x1e3   : > { %v1089_v18 = vsel %vm1087_vm14, %v1088_v33, %v1086_v0  ;;  %v1434_v60 = vadd.f32 %v5630_v40, %v1391_v19  ;;  %vm1094_vm11 = vcmp.eq.f32.partialorder %v5073_v61, 0.0  ;;  %2686 = vrsqrt.f32 %v5179_v35 }
 0x1e4   : > { %v1145_v10 = vsel %vm5036_vm1, %v1089_v18, 0.0  ;;  %v1093_v56 = vsel %vm1092_vm13, %v5073_v61, %v1091_v32  ;;  %2688 = vrsqrt.f32 %v5183_v41  ;;  %vm480_vm1 = vcmp.ne.s32.totalorder %v5098_v5, %v3289_v58  ;;  %v2700_v18 = vld [vmem:[%s2866_s26 + $0x28] sm:$0xff] }
 0x1e5   : > { %1177 = vst [vmem:[%s3599_s19 + $0xd8] sm:$0xff] %v1145_v10  ;;  %v1096_v22 = vsel %vm1094_vm11, %v1095_v30, %v1093_v56  ;;  %vm1793_vm15 = vcmp.eq.f32.partialorder %v5129_v29, inf  ;;  %vm1795_vm3 = vcmp.eq.f32.partialorder %v5129_v29, 0.0  ;;  %v1796_v20 = vand.u32 2147483648, %v5129_v29  ;;  %v2699_v30 = vld [vmem:[%s2866_s26 + $0x10] sm:$0xff] }
 0x1e6   : > { %v1146_v40 = vsel %vm5063_vm8, %v1096_v22, 0.0  ;;  %v1497_v61 = vsub.f32 %v1433_v14, %v1465_v7  ;;  %v1498_v63 = vsub.f32 %v1434_v60, %v1466_v57  ;;  %v765_v24 = vmul.f32 2.0, %v5680_v25 }
 0x1e7   : > { %1178 = vst [vmem:[%s3599_s19 + $0xe0] sm:$0xff] %v1146_v40  ;;  %v1978_v51 = vadd.f32 %v4141_v42, %v5196_v12  ;;  %vm1800_vm4 = vcmp.eq.f32.partialorder %v5138_v8, inf  ;;  %vm1802_vm7 = vcmp.eq.f32.partialorder %v5138_v8, 0.0  ;;  %v1803_v50 = vand.u32 2147483648, %v5138_v8 }
 0x1e8   : > { %v1973_v1 = vadd.f32 %v5196_v12, %v4151_v3  ;;  %vm1099_vm8 = vcmp.eq.f32.partialorder %v5179_v35, inf  ;;  %vm1529_vm14 = vcmp.gt.f32.partialorder %v1497_v61, 0.0  ;;  %vm1530_vm2 = vcmp.gt.f32.partialorder %v1498_v63, 0.0  ;;  %v2696_v3 = vld [vmem:[%s2866_s26 + $0x8] sm:$0xff] }
 0x1e9   : > { %v2683_v62 = vpop.eup %2682  ;;  %v797_v46 = vsub.f32 %v5681_v27, %v765_v24  ;;  %vm1101_vm9 = vcmp.eq.f32.partialorder %v5179_v35, 0.0  ;;  %vm5223_vm13 = vmand %vm479_vm10, %vm1529_vm14  ;;  %v2052_v26 = vsub.f32 %v1978_v51, %v2696_v3  ;;  %v1988_v16 = vadd.f32 %v4178_v37, %v5196_v12 }
 0x1ea   : > { %v1792_v53 = vmul.f32 %v2683_v62, %v5129_v29  ;;  %v2685_v43 = vpop.eup %2684  ;;  %vm5233_vm11 = vmand %vm480_vm1, %vm1530_vm2  ;;  %v5239_v49 = vsel %vm5223_vm13, %v1497_v61, 1.0  ;;  %v2051_v45 = vsub.f32 %v1973_v1, %v2697_v9  ;;  %v1983_v47 = vadd.f32 %v5196_v12, %v4188_v21 }
 0x1eb   : > { %vm829_vm10 = vcmp.gt.f32.partialorder %v797_v46, 0.0  ;;  %v1799_v23 = vmul.f32 %v2685_v43, %v5138_v8  ;;  %v5250_v39 = vsel %vm5233_vm11, %v1498_v63, 1.0  ;;  %2690 = vrsqrt.f32 %v5239_v49  ;;  %v5689_v63 = vld [vmem:[#allocation3_spill] sm:$0xff] }
 0x1ec   : > { %v1794_v37 = vsel %vm1793_vm15, %v5129_v29, %v1792_v53  ;;  %v1102_v21 = vand.u32 2147483648, %v5179_v35  ;;  %vm1106_vm14 = vcmp.eq.f32.partialorder %v5183_v41, inf  ;;  %vm5260_vm15 = vmand %vm480_vm1, %vm829_vm10  ;;  %v1998_v19 = vadd.f32 %v4208_v59, %v5196_v12  ;;  %v2698_v59 = vld [vmem:[%s2866_s26 + $0x18] sm:$0xff] }
 0x1ed   : > { %v1797_v55 = vsel %vm1795_vm3, %v1796_v20, %v1794_v37  ;;  %v2687_v54 = vpop.eup %2686  ;;  %v1801_v29 = vsel %vm1800_vm4, %v5138_v8, %v1799_v23  ;;  %2692 = vrsqrt.f32 %v5250_v39  ;;  %v2068_v33 = vmul.f32 %v2052_v26, %v2052_v26  ;;  %v2704_v23 = vld [vmem:[%s2866_s26 + $0x40] sm:$0xff] }
 0x1ee   : > { %v1847_v36 = vsel %vm5110_vm12, %v1797_v55, 0.0  ;;  %v2689_v58 = vpop.eup %2688  ;;  %v1804_v5 = vsel %vm1802_vm7, %v1803_v50, %v1801_v29  ;;  %v1098_v6 = vmul.f32 %v2687_v54, %v5179_v35  ;;  %v2054_v52 = vsub.f32 %v1988_v16, %v2698_v59  ;;  %v5690_v16 = vld [vmem:[#allocation43_spill] sm:$0xff]  ;;  %v5691_v29 = vld [vmem:[#allocation30_spill] sm:$0xff] }
 0x1ef   : > { %1879 = vst [vmem:[%s3628_s22 + $0xe0] sm:$0xff] %v1847_v36  ;;  %v2053_v17 = vsub.f32 %v1983_v47, %v2699_v30  ;;  %v1848_v15 = vsel %vm5123_vm5, %v1804_v5, 0.0  ;;  %v1105_v7 = vmul.f32 %v2689_v58, %v5183_v41  ;;  %v5283_v0 = vsel %vm5260_vm15, %v797_v46, 1.0  ;;  %v2702_v46 = vld [vmem:[%s2866_s26 + $0x30] sm:$0xff]  ;;  %v2703_v47 = vld [vmem:[%s2866_s26 + $0x38] sm:$0xff]  ;;  %v5692_v30 = vld [vmem:[#allocation23_spill] sm:$0xff] }
 0x1f0   : > { %v2067_v8 = vmul.f32 %v2051_v45, %v2051_v45  ;;  %1880 = vst [vmem:[%s3628_s22 + $0xe8] sm:$0xff] %v1848_v15  ;;  %v1100_v32 = vsel %vm1099_vm8, %v5179_v35, %v1098_v6  ;;  %vm1108_vm12 = vcmp.eq.f32.partialorder %v5183_v41, 0.0  ;;  %v1109_v28 = vand.u32 2147483648, %v5183_v41 }
 0x1f1   : > { %2694 = vrsqrt.f32 %v5283_v0  ;;  %v1103_v2 = vsel %vm1101_vm9, %v1102_v21, %v1100_v32  ;;  %v1107_v57 = vsel %vm1106_vm14, %v5183_v41, %v1105_v7  ;;  %v2056_v60 = vsub.f32 %v1998_v19, %v2700_v18  ;;  %v2705_v7 = vld [vmem:[%s2866_s26 + $0x48] sm:$0xff] }
 0x1f2   : > { %v2083_v14 = vadd.f32 %v2068_v33, %v2067_v8  ;;  %v1147_v10 = vsel %vm5145_vm0, %v1103_v2, 0.0  ;;  %v1110_v56 = vsel %vm1108_vm12, %v1109_v28, %v1107_v57  ;;  %vm1807_vm5 = vcmp.eq.f32.partialorder %v5239_v49, inf  ;;  %v2706_v2 = vld [vmem:[%s2866_s26 + $0x50] sm:$0xff] }
 0x1f3   : > { %v2069_v22 = vmul.f32 %v2053_v17, %v2053_v17  ;;  %1179 = vst [vmem:[%s3599_s19 + $0xe8] sm:$0xff] %v1147_v10  ;;  %v1148_v35 = vsel %vm5159_vm6, %v1110_v56, 0.0  ;;  %vm1809_vm1 = vcmp.eq.f32.partialorder %v5239_v49, 0.0  ;;  %v2070_v40 = vmul.f32 %v2054_v52, %v2054_v52 }
 0x1f4   : > { %v1993_v41 = vadd.f32 %v5196_v12, %v4214_v48  ;;  %1180 = vst [vmem:[%s3599_s19 + $0xf0] sm:$0xff] %v1148_v35  ;;  %v2008_v61 = vadd.f32 %v5688_v4, %v5196_v12  ;;  %v2003_v25 = vadd.f32 %v5196_v12, %v5689_v63  ;;  %v2013_v24 = vadd.f32 %v5196_v12, %v4289_v13  ;;  %v2701_v48 = vld [vmem:[%s2866_s26 + $0x20] sm:$0xff] }
 0x1f5   : > { %v2084_v20 = vadd.f32 %v2083_v14, %v2069_v22  ;;  %v2691_v44 = vpop.eup %2690  ;;  %v1810_v51 = vand.u32 2147483648, %v5239_v49  ;;  %vm1814_vm0 = vcmp.eq.f32.partialorder %v5250_v39, inf  ;;  %vm1816_vm6 = vcmp.eq.f32.partialorder %v5250_v39, 0.0  ;;  %v5693_v14 = vld [vmem:[#allocation31_spill] sm:$0xff]  ;;  %v2707_v22 = vld [vmem:[%s2866_s26 + $0x58] sm:$0xff] }
 0x1f6   : > { %v2055_v50 = vsub.f32 %v1993_v41, %v2701_v48  ;;  %v1806_v1 = vmul.f32 %v2691_v44, %v5239_v49  ;;  %v1817_v62 = vand.u32 2147483648, %v5250_v39  ;;  %v2057_v53 = vsub.f32 %v2003_v25, %v2702_v46 }
 0x1f7   : > { %v2085_v27 = vadd.f32 %v2084_v20, %v2070_v40  ;;  %v2693_v3 = vpop.eup %2692  ;;  %vm1113_vm3 = vcmp.eq.f32.partialorder %v5283_v0, inf  ;;  %v2072_v13 = vmul.f32 %v2056_v60, %v2056_v60  ;;  %v2018_v43 = vadd.f32 %v5690_v16, %v5196_v12  ;;  %v5694_v40 = vld [vmem:[#allocation29_spill] sm:$0xff] }
 0x1f8   : > { %v2071_v26 = vmul.f32 %v2055_v50, %v2055_v50  ;;  %v1808_v9 = vsel %vm1807_vm5, %v5239_v49, %v1806_v1  ;;  %v1813_v45 = vmul.f32 %v2693_v3, %v5250_v39  ;;  %v2058_v37 = vsub.f32 %v2008_v61, %v2703_v47  ;;  %v2708_v61 = vld [vmem:[%s2866_s26 + $0x60] sm:$0xff]  ;;  %v2710_v1 = vld [vmem:[%s2866_s26 + $0x70] sm:$0xff]  ;;  %v2711_v3 = vld [vmem:[%s2866_s26 + $0x78] sm:$0xff] }
 0x1f9   : > { %v2059_v55 = vsub.f32 %v2013_v24, %v2704_v23  ;;  %v1811_v21 = vsel %vm1809_vm1, %v1810_v51, %v1808_v9  ;;  %v2073_v54 = vmul.f32 %v2057_v53, %v2057_v53  ;;  %v2023_v36 = vadd.f32 %v5196_v12, %v5691_v29  ;;  %v2709_v24 = vld [vmem:[%s2866_s26 + $0x68] sm:$0xff] }
 0x1fa   : > { %v2086_v19 = vadd.f32 %v2085_v27, %v2071_v26  ;;  %v1815_v58 = vsel %vm1814_vm0, %v5250_v39, %v1813_v45  ;;  %v1849_v5 = vsel %vm5223_vm13, %v1811_v21, 0.0  ;;  %vm1115_vm4 = vcmp.eq.f32.partialorder %v5283_v0, 0.0 }
 0x1fb   : > { %v2695_v33 = vpop.eup %2694  ;;  %v1116_v49 = vand.u32 2147483648, %v5283_v0  ;;  %v1818_v6 = vsel %vm1816_vm6, %v1817_v62, %v1815_v58  ;;  %1881 = vst [vmem:[%s3628_s22 + $0xf0] sm:$0xff] %v1849_v5  ;;  %v2028_v17 = vadd.f32 %v5692_v30, %v5196_v12  ;;  %v2074_v15 = vmul.f32 %v2058_v37, %v2058_v37 }
 0x1fc   : > { %v1112_v59 = vmul.f32 %v2695_v33, %v5283_v0  ;;  %v2087_v52 = vadd.f32 %v2086_v19, %v2072_v13  ;;  %v1850_v42 = vsel %vm5233_vm11, %v1818_v6, 0.0  ;;  %v2060_v8 = vsub.f32 %v2018_v43, %v2705_v7 }
 0x1fd   : > { %v2075_v32 = vmul.f32 %v2059_v55, %v2059_v55  ;;  %1882 = vst [vmem:[%s3628_s22 + $0xf8] sm:$0xff] %v1850_v42  ;;  %v2061_v57 = vsub.f32 %v2023_v36, %v2706_v2  ;;  %v2033_v18 = vadd.f32 %v5196_v12, %v5693_v14  ;;  %v2062_v35 = vsub.f32 %v2028_v17, %v2707_v22 }
 0x1fe   : > { %v1114_v39 = vsel %vm1113_vm3, %v5283_v0, %v1112_v59  ;;  %v2088_v28 = vadd.f32 %v2087_v52, %v2073_v54  ;;  %v2076_v56 = vmul.f32 %v2060_v8, %v2060_v8  ;;  %v2038_v41 = vadd.f32 %v5694_v40, %v5196_v12 }
 0x1ff   : > { %v1117_v11 = vsel %vm1115_vm4, %v1116_v49, %v1114_v39  ;;  %v2077_v4 = vmul.f32 %v2061_v57, %v2061_v57  ;;  %v2063_v63 = vsub.f32 %v2033_v18, %v2708_v61  ;;  %v2043_v0 = vadd.f32 %v5196_v12, %v4410_v31 }
 0x200   : > { %v1149_v60 = vsel %vm5260_vm15, %v1117_v11, 0.0  ;;  %v2089_v10 = vadd.f32 %v2088_v28, %v2074_v15  ;;  %v2078_v38 = vmul.f32 %v2062_v35, %v2062_v35  ;;  %v2064_v44 = vsub.f32 %v2038_v41, %v2709_v24 }
 0x201   : > { %1181 = vst [vmem:[%s3599_s19 + $0xf8] sm:$0xff] %v1149_v60  ;;  %v2079_v48 = vmul.f32 %v2063_v63, %v2063_v63  ;;  %v2048_v50 = vadd.f32 %v4402_v34, %v5196_v12  ;;  %v2065_v62 = vsub.f32 %v2043_v0, %v2710_v1 }
 0x202   : > { %v2090_v20 = vadd.f32 %v2089_v10, %v2075_v32  ;;  %v2080_v46 = vmul.f32 %v2064_v44, %v2064_v44 }
 0x203   : > { %v2066_v13 = vsub.f32 %v2048_v50, %v2711_v3  ;;  %v2081_v26 = vmul.f32 %v2065_v62, %v2065_v62 }
 0x204   : > { %v2091_v25 = vadd.f32 %v2090_v20, %v2076_v56 }
 0x205   : > { %v2082_v16 = vmul.f32 %v2066_v13, %v2066_v13 }
 0x206   : > { %v2092_v51 = vadd.f32 %v2091_v25, %v2077_v4 }
 0x208   : > { %v2093_v27 = vadd.f32 %v2092_v51, %v2078_v38 }
 0x20a   : > { %v2094_v53 = vadd.f32 %v2093_v27, %v2079_v48 }
 0x20c   : > { %v2095_v31 = vadd.f32 %v2094_v53, %v2080_v46 }
 0x20e   : > { %v2096_v43 = vadd.f32 %v2095_v31, %v2081_v26 }
 0x210   : > { %v2097_v9 = vadd.f32 %v2096_v43, %v2082_v16 }
 0x212   : > { %v2098_v45 = vrot.slane %v2097_v9, 4 }
 0x214   : > { %v2099_v47 = vadd.f32 %v2098_v45, %v2097_v9 }
 0x216   : > { %v2100_v37 = vrot.slane %v2099_v47, 2 }
 0x218   : > { %v2101_v23 = vadd.f32 %v2100_v37, %v2099_v47 }
 0x21a   : > { %v2102_v34 = vrot.slane %v2101_v23, 1 }
 0x21c   : > { %v2103_v12 = vadd.f32 %v2102_v34, %v2101_v23 }
 0x21e   : > { %2104 = vst [vmem:[%s312_s10] sm:$0x1] %v2103_v12 }
 0x21f PF: > { %s19_s27 = sadd.s32 1, %s2718_s27  }
 0x220   : > { %p16_p5 = scmp.ge.s32.totalorder %s19_s27, 4  }
 0x222   :  { %18 = sbr.rel (!%p16_p5) target bundleno = 1 (0x1), region = 97 }

</bundles_post_ra>
